<compile_context>
chip_gen: v7x
topology: tpu7x:2x2x1
jax: 0.10.0
libtpu: 0.0.40
codegen_flags: <defaults>
</compile_context>

<pallas_src>
import functools

import jax
import jax.numpy as jnp
from jax import lax
from jax.experimental import pallas as pl
from jax.experimental.pallas import tpu as pltpu

EPS = 1e-5  # PyTorch GroupNorm default


def _group_norm_grouped(x, gamma, beta, avg):
    """GroupNorm over a (C, N) slab using a precomputed (C, C) group-average
    matrix avg[c, c'] = 1/(group_size*N) if same group else 0."""
    s = jnp.sum(x, axis=-1, keepdims=True)                               # (C,1)
    mean_c = jnp.dot(avg, s, preferred_element_type=jnp.float32)         # (C,1)
    xc = x - mean_c
    s2 = jnp.sum(xc * xc, axis=-1, keepdims=True)                        # (C,1)
    var_c = jnp.dot(avg, s2, preferred_element_type=jnp.float32)         # (C,1)
    inv_c = lax.rsqrt(var_c + EPS)
    return xc * inv_c * gamma + beta


def _group_norm_whole(x, gamma, beta):
    """GroupNorm(num_groups=1) over a (C, N) slab."""
    mean = jnp.mean(x)
    xc = x - mean
    var = jnp.mean(xc * xc)                       # centered variance
    inv = lax.rsqrt(var + EPS)
    return xc * inv * gamma + beta


def _attend_one(x, g1, b1, wqk_t, wv_t, wout, bout, g2, b2, avg, mask_scale,
                q_scr, *, heads, dim_head, mxu_dtype):
    """LinearAttention forward on one (C, N) slab. Returns (C, N) f32."""
    hidden = heads * dim_head

    # self.norm = GroupNorm(numgroups, dim): f32 VPU/XLU math.
    xn = _group_norm_grouped(x, g1, b1, avg)
    xn_m = xn.astype(mxu_dtype)

    # to_qkv split: q/k need f32 softmax stats; v is produced directly in the
    # MXU operand dtype (no later cast, no extra f32 (hidden,N) temporary).
    qk = lax.dot_general(wqk_t, xn_m, (((0,), (0,)), ((), ())),
                         preferred_element_type=jnp.float32)         # (2h, N)
    v_m = lax.dot_general(wv_t, xn_m, (((0,), (0,)), ((), ())),
                          preferred_element_type=mxu_dtype)          # (h, N)

    q_all = qk[0:hidden, :]
    k_all = qk[hidden:2 * hidden, :]

    # k.softmax(dim=-1): only the numerator is materialized over N; the
    # denominator 1/ksum is folded into the (hidden,hidden) context scale
    # below (saves a full (hidden,N) normalization pass).
    km = jnp.max(k_all, axis=-1, keepdims=True)
    ke = jnp.exp(k_all - km)                                          # (h, N)
    kinv = 1.0 / jnp.sum(ke, axis=-1, keepdims=True)                  # (h, 1)

    # q.softmax(dim=-2): per-head sublane softmax; divide replaced by EUP
    # approximate reciprocal + multiply.  Normalized rows go straight into
    # the (hidden, N) VMEM scratch at static offsets (no concatenate).
    for h in range(heads):
        qh = q_all[h * dim_head:(h + 1) * dim_head, :]
        qm = jnp.max(qh, axis=0, keepdims=True)
        qe = jnp.exp(qh - qm)
        qinv = pl.reciprocal(jnp.sum(qe, axis=0, keepdims=True), approx=True)
        q_scr[pl.ds(h * dim_head, dim_head), :] = (qe * qinv).astype(
            q_scr.dtype)

    # Merged-head context: one (hidden,hidden) Gram on the MXU, then a single
    # tiny elementwise scale mask_scale[d,e] * kinv[d] (block-diagonal mask,
    # dim_head**-0.5 and the k-softmax denominator all folded in).
    # TODO(synk): for hidden >= 256, split into 128-wide merged head groups to
    # cap the masked-out FLOP waste.
    gram = lax.dot_general(ke.astype(mxu_dtype), v_m,
                           (((1,), (1,)), ((), ())),
                           preferred_element_type=jnp.float32)        # (d, e)
    ctx = gram * mask_scale * kinv                                    # (d, e)

    # out[e, n] = sum_d ctx[d, e] * q[d, n]: one hidden-wide matmul,
    # contracting dim 0 of both operands; output stays in mxu_dtype so the
    # to_out matmul needs no extra cast pass.
    out_full = lax.dot_general(ctx.astype(mxu_dtype), q_scr[...],
                               (((0,), (0,)), ((), ())),
                               preferred_element_type=mxu_dtype)      # (e, N)

    # to_out[0]: 1x1 conv with bias; to_out[1]: GroupNorm(1, dim).
    y = jnp.dot(wout, out_full, preferred_element_type=jnp.float32) + bout
    return _group_norm_whole(y, g2, b2)


def _linear_attention_kernel(x_ref, pvec_ref, wqk_t_ref, wv_t_ref, wout_ref,
                             avg_ref, mask_scale_ref, o_ref, q_scr, *,
                             heads, dim_head, mxu_dtype, batch_block):
    # Loop-invariant reads hoisted out of the unrolled batch loop.
    p = pvec_ref[...]
    g1, b1 = p[:, 0:1], p[:, 1:2]
    bout, g2, b2 = p[:, 2:3], p[:, 3:4], p[:, 4:5]
    wqk_t = wqk_t_ref[...]
    wv_t = wv_t_ref[...]
    wout = wout_ref[...]
    avg = avg_ref[...]
    mask_scale = mask_scale_ref[...]

    for bi in range(batch_block):        # static unroll; amortizes step setup
        y = _attend_one(x_ref[bi], g1, b1, wqk_t, wv_t, wout, bout, g2, b2,
                        avg, mask_scale, q_scr, heads=heads,
                        dim_head=dim_head, mxu_dtype=mxu_dtype)
        o_ref[bi] = y.astype(o_ref.dtype)


def _vmem_limit_bytes(batch_block, C, N, hidden, itm):
    """Explicit VMEM budget: count the actual live set, leave HW headroom."""
    f32 = 4
    est = (
        2 * 2 * batch_block * C * N * f32                  # x/out, dbl-buffered
        + 2 * (C * 3 * hidden * itm                        # wqk_t + wv_t + wout
               + C * C * f32 + hidden * hidden * f32       # avg + mask_scale
               + C * 8 * f32)                              # fused params
        + 3 * C * N * f32 + C * N * itm                    # xn / xc / y + cast
        + 2 * hidden * N * f32                             # qk slab (q, k)
        + hidden * N * f32 + hidden * N * itm              # ke + MXU copy
        + hidden * N * itm                                 # v (mxu dtype)
        + hidden * N * itm                                 # out_full
        + hidden * N * itm                                 # q_scr scratch
        + 3 * hidden * hidden * f32                        # gram / ctx / cast
    )
    try:
        phys = pltpu.get_tpu_info().vmem_capacity_bytes
    except Exception:
        phys = 64 * 1024 * 1024                            # conservative
    # v7x: 64 MiB phys -> 48 MiB cap; v5e/v6e: 128 MiB phys -> 110 MiB cap.
    cap = min(phys - 16 * 1024 * 1024, 110 * 1024 * 1024)
    return int(min(cap, max(32 * 1024 * 1024, int(1.25 * est))))


def linear_attention(x, params, *, heads=4, dim_head=32, numgroups=8,
                     mxu_dtype=jnp.float32, batch_block=1):
    """x: (B, C, H, W) float32 NCHW. Returns (B, C, H, W) float32.

    mxu_dtype=jnp.bfloat16 casts MXU operands only (recommended on all
    generations, incl. v5e whose MXU is bf16-native); softmax / GroupNorm
    statistics stay in float32.  On v7x keep batch_block small so the grid
    (B // batch_block) stays >= 2 for its two TensorCores.
    """
    g1, b1, wqkv, wout, bout, g2, b2 = params
    B, C, H, W = x.shape
    N = H * W
    hidden = heads * dim_head
    scale = dim_head ** (-0.5)
    itm = jnp.dtype(mxu_dtype).itemsize

    # TODO(synk): no padding path (N must be a multiple of 128, C of 8); very
    # large H*W on v7x (64 MiB VMEM) needs an N-tiled two-pass restructure
    # (accumulate k-softmax stats + Gram per N chunk, then emit the output).
    assert N % 128 == 0, "H*W must be a multiple of 128 (lane dim)"
    assert C % 8 == 0 and C % numgroups == 0, "C must be 8- and group-aligned"
    assert hidden % 8 == 0
    assert B % batch_block == 0
    if itm == 2:
        # bf16 q_scr packs 16 sublanes per tile; head offsets must be aligned.
        assert dim_head % 16 == 0, "bf16 path needs dim_head % 16 == 0"

    xf = x.reshape(B, C, N)

    # Host-side invariants: weights pre-cast/pre-split, group-average matrix
    # and blockmask*scale precomputed (nothing re-emitted per batch element).
    wqkv_t = jnp.transpose(wqkv)                           # (C, 3*hidden)
    wqk_t = wqkv_t[:, :2 * hidden].astype(mxu_dtype)       # q/k weight (C, 2h)
    wv_t = wqkv_t[:, 2 * hidden:].astype(mxu_dtype)        # v weight   (C, h)
    wout_m = wout.astype(mxu_dtype)                        # (C, hidden)

    gidx = jnp.arange(C, dtype=jnp.int32) // (C // numgroups)
    avg = (gidx[:, None] == gidx[None, :]).astype(jnp.float32) / float(
        (C // numgroups) * N)                              # (C, C)

    hidx = jnp.arange(hidden, dtype=jnp.int32) // dim_head
    mask_scale = (hidx[:, None] == hidx[None, :]).astype(
        jnp.float32) * scale                               # (hidden, hidden)

    # Five (C,1) per-channel params fused into one lane-padded (C, 8) block.
    pvec = jnp.concatenate(
        [g1, b1, bout, g2, b2, jnp.zeros((C, 3), jnp.float32)], axis=1)

    vmem_limit = _vmem_limit_bytes(batch_block, C, N, hidden, itm)

    kernel = functools.partial(
        _linear_attention_kernel, heads=heads, dim_head=dim_head,
        mxu_dtype=mxu_dtype, batch_block=batch_block)

    out = pl.pallas_call(
        kernel,
        out_shape=jax.ShapeDtypeStruct((B, C, N), jnp.float32),
        grid_spec=pltpu.PrefetchScalarGridSpec(
            num_scalar_prefetch=0,
            grid=(B // batch_block,),
            in_specs=[
                pl.BlockSpec((batch_block, C, N), lambda b: (b, 0, 0)),  # x
                pl.BlockSpec((C, 8), lambda b: (0, 0)),            # fused params
                pl.BlockSpec((C, 2 * hidden), lambda b: (0, 0)),   # to_qkv qk^T
                pl.BlockSpec((C, hidden), lambda b: (0, 0)),       # to_qkv v^T
                pl.BlockSpec((C, hidden), lambda b: (0, 0)),       # to_out[0].w
                pl.BlockSpec((C, C), lambda b: (0, 0)),            # group avg
                pl.BlockSpec((hidden, hidden), lambda b: (0, 0)),  # mask*scale
            ],
            out_specs=pl.BlockSpec((batch_block, C, N), lambda b: (b, 0, 0)),
            scratch_shapes=[pltpu.VMEM((hidden, N), mxu_dtype)],
        ),
        compiler_params=pltpu.CompilerParams(
            dimension_semantics=("parallel",),
            vmem_limit_bytes=vmem_limit),
    )(xf, pvec, wqk_t, wv_t, wout_m, avg, mask_scale)

    return out.reshape(B, C, H, W)


def reference_forward(x, params, *, heads=4, dim_head=32, numgroups=8):
    """Pure-JAX mirror of the PyTorch forward (for validation)."""
    g1, b1, wqkv, wout, bout, g2, b2 = params
    B, C, H, W = x.shape
    N = H * W
    hidden = heads * dim_head

    def gn(t, gamma, beta, ng):
        Bt, Ct = t.shape[:2]
        tr = t.reshape(Bt, ng, -1)
        mean = tr.mean(axis=-1, keepdims=True)
        var = tr.var(axis=-1, keepdims=True)
        tn = ((tr - mean) / jnp.sqrt(var + EPS)).reshape(t.shape)
        return tn * gamma.reshape(1, Ct, 1, 1) + beta.reshape(1, Ct, 1, 1)

    xn = gn(x, g1, b1, numgroups)
    qkv = jnp.einsum('oc,bchw->bohw', wqkv, xn)
    q, k, v = jnp.split(qkv, 3, axis=1)
    q = q.reshape(B, heads, dim_head, N)
    k = k.reshape(B, heads, dim_head, N)
    v = v.reshape(B, heads, dim_head, N)
    q = jax.nn.softmax(q, axis=-2) * (dim_head ** -0.5)
    k = jax.nn.softmax(k, axis=-1)
    context = jnp.einsum('bhdn,bhen->bhde', k, v)
    out = jnp.einsum('bhde,bhdn->bhen', context, q)
    out = out.reshape(B, hidden, H, W)
    y = jnp.einsum('oc,bchw->bohw', wout, out) + bout.reshape(1, C, 1, 1)
    return gn(y, g2, b2, 1)


if __name__ == "__main__":
    B, dim, H, W = 2, 16, 16, 16            # dim divisible by numgroups=8
    heads, dim_head, numgroups = 4, 32, 8
    hidden = heads * dim_head

    key = jax.random.PRNGKey(0)
    kx, k1, k2, k3, k4, k5, k6, k7 = jax.random.split(key, 8)

    x = jax.random.normal(kx, (B, dim, H, W), dtype=jnp.float32)

    # Deterministic synthetic parameters (shapes per the module __init__).
    wqkv = 0.1 * jax.random.normal(k1, (3 * hidden, dim), dtype=jnp.float32)
    wout = 0.1 * jax.random.normal(k2, (dim, hidden), dtype=jnp.float32)
    bout = 0.05 * jax.random.normal(k3, (dim, 1), dtype=jnp.float32)
    g1 = 1.0 + 0.1 * jax.random.normal(k4, (dim, 1), dtype=jnp.float32)
    b1 = 0.1 * jax.random.normal(k5, (dim, 1), dtype=jnp.float32)
    g2 = 1.0 + 0.1 * jax.random.normal(k6, (dim, 1), dtype=jnp.float32)
    b2 = 0.1 * jax.random.normal(k7, (dim, 1), dtype=jnp.float32)
    params = (g1, b1, wqkv, wout, bout, g2, b2)

    ref = jax.block_until_ready(reference_forward(
        x, params, heads=heads, dim_head=dim_head, numgroups=numgroups))

    # Tolerance note: the f32 path uses pl.reciprocal(approx=True) for the
    # q-softmax denominator (EUP), so the tolerance is 5e-3 instead of 3e-4.
    # 1) f32 MXU path.
    out_f32 = jax.block_until_ready(linear_attention(
        x, params, heads=heads, dim_head=dim_head, numgroups=numgroups))
    assert out_f32.shape == (B, dim, H, W)
    assert jnp.allclose(out_f32, ref, atol=5e-3, rtol=5e-3), (
        float(jnp.max(jnp.abs(out_f32 - ref))))

    # 2) Two batch elements per grid step (amortized step overhead).
    out_bb = jax.block_until_ready(linear_attention(
        x, params, heads=heads, dim_head=dim_head, numgroups=numgroups,
        batch_block=2))
    assert jnp.allclose(out_bb, ref, atol=5e-3, rtol=5e-3), (
        float(jnp.max(jnp.abs(out_bb - ref))))

    # 3) bf16 MXU-operand path (recommended on all generations); stats in f32.
    out_bf16 = jax.block_until_ready(linear_attention(
        x, params, heads=heads, dim_head=dim_head, numgroups=numgroups,
        mxu_dtype=jnp.bfloat16))
    assert jnp.allclose(out_bf16, ref, atol=5e-2, rtol=5e-2), (
        float(jnp.max(jnp.abs(out_bf16 - ref))))

    print("KERNEL_OK")
</pallas_src>

<mosaic_0001>
module attributes {stable_mosaic.version = 11 : i64} {
  func.func @_linear_attention_kernel(%arg0: i32, %arg1: memref<1x16x256xf32, #tpu.memory_space<vmem>>, %arg2: memref<16x8xf32, #tpu.memory_space<vmem>>, %arg3: memref<16x256xf32, #tpu.memory_space<vmem>>, %arg4: memref<16x128xf32, #tpu.memory_space<vmem>>, %arg5: memref<16x128xf32, #tpu.memory_space<vmem>>, %arg6: memref<16x16xf32, #tpu.memory_space<vmem>>, %arg7: memref<128x128xf32, #tpu.memory_space<vmem>>, %arg8: memref<1x16x256xf32, #tpu.memory_space<vmem>>, %arg9: memref<128x256xf32, #tpu.memory_space<vmem>>) attributes {dimension_semantics = [#tpu.dimension_semantics<parallel>], iteration_bounds = array<i64: 2>, scalar_prefetch = 0 : i64, scratch_operands = 1 : i64, tpu.core_type = #tpu.core_type<tc>, window_params = [{transform_indices = @transform_0, window_bounds = array<i64: 1, 16, 256>}, {pipeline_mode = #tpu.pipeline_mode<synchronous>, transform_indices = @transform_1, window_bounds = array<i64: 16, 8>}, {pipeline_mode = #tpu.pipeline_mode<synchronous>, transform_indices = @transform_2, window_bounds = array<i64: 16, 256>}, {pipeline_mode = #tpu.pipeline_mode<synchronous>, transform_indices = @transform_3, window_bounds = array<i64: 16, 128>}, {pipeline_mode = #tpu.pipeline_mode<synchronous>, transform_indices = @transform_4, window_bounds = array<i64: 16, 128>}, {pipeline_mode = #tpu.pipeline_mode<synchronous>, transform_indices = @transform_5, window_bounds = array<i64: 16, 16>}, {pipeline_mode = #tpu.pipeline_mode<synchronous>, transform_indices = @transform_6, window_bounds = array<i64: 128, 128>}, {transform_indices = @transform_7, window_bounds = array<i64: 1, 16, 256>}]} {
    %c0 = arith.constant 0 : index
    %c0_0 = arith.constant 0 : index
    %0 = vector.load %arg2[%c0, %c0_0] : memref<16x8xf32, #tpu.memory_space<vmem>>, vector<16x8xf32>
    %1 = vector.extract_strided_slice %0 {offsets = [0, 0], sizes = [16, 1], strides = [1, 1]} : vector<16x8xf32> to vector<16x1xf32>
    %2 = vector.extract_strided_slice %0 {offsets = [0, 1], sizes = [16, 1], strides = [1, 1]} : vector<16x8xf32> to vector<16x1xf32>
    %3 = vector.extract_strided_slice %0 {offsets = [0, 2], sizes = [16, 1], strides = [1, 1]} : vector<16x8xf32> to vector<16x1xf32>
    %4 = vector.extract_strided_slice %0 {offsets = [0, 3], sizes = [16, 1], strides = [1, 1]} : vector<16x8xf32> to vector<16x1xf32>
    %5 = vector.extract_strided_slice %0 {offsets = [0, 4], sizes = [16, 1], strides = [1, 1]} : vector<16x8xf32> to vector<16x1xf32>
    %c0_1 = arith.constant 0 : index
    %c0_2 = arith.constant 0 : index
    %6 = vector.load %arg3[%c0_1, %c0_2] : memref<16x256xf32, #tpu.memory_space<vmem>>, vector<16x256xf32>
    %c0_3 = arith.constant 0 : index
    %c0_4 = arith.constant 0 : index
    %7 = vector.load %arg4[%c0_3, %c0_4] : memref<16x128xf32, #tpu.memory_space<vmem>>, vector<16x128xf32>
    %c0_5 = arith.constant 0 : index
    %c0_6 = arith.constant 0 : index
    %8 = vector.load %arg5[%c0_5, %c0_6] : memref<16x128xf32, #tpu.memory_space<vmem>>, vector<16x128xf32>
    %c0_7 = arith.constant 0 : index
    %c0_8 = arith.constant 0 : index
    %9 = vector.load %arg6[%c0_7, %c0_8] : memref<16x16xf32, #tpu.memory_space<vmem>>, vector<16x16xf32>
    %c0_9 = arith.constant 0 : index
    %c0_10 = arith.constant 0 : index
    %10 = vector.load %arg7[%c0_9, %c0_10] : memref<128x128xf32, #tpu.memory_space<vmem>>, vector<128x128xf32>
    %c0_11 = arith.constant 0 : index
    %c0_12 = arith.constant 0 : index
    %c0_13 = arith.constant 0 : index
    %11 = vector.load %arg1[%c0_11, %c0_12, %c0_13] : memref<1x16x256xf32, #tpu.memory_space<vmem>>, vector<1x16x256xf32>
    %12 = vector.shape_cast %11 : vector<1x16x256xf32> to vector<16x256xf32>
    %cst = arith.constant dense<0.000000e+00> : vector<16xf32>
    %13 = vector.multi_reduction <add>, %12, %cst [1] : vector<16x256xf32> to vector<16xf32>
    %14 = vector.shape_cast %13 : vector<16xf32> to vector<16x1xf32>
    %cst_14 = arith.constant dense<0.000000e+00> : vector<16x1xf32>
    %15 = tpu.matmul %9, %14, %cst_14 {dimension_numbers = #tpu.dot_dimension_numbers<[1], [0], [0], [1], [0, 0, 1, 1], [], []>} : vector<16x16xf32>, vector<16x1xf32>, vector<16x1xf32> -> vector<16x1xf32>
    %16 = vector.broadcast %15 : vector<16x1xf32> to vector<16x256xf32>
    %17 = arith.subf %12, %16 : vector<16x256xf32>
    %18 = arith.mulf %17, %17 : vector<16x256xf32>
    %cst_15 = arith.constant dense<0.000000e+00> : vector<16xf32>
    %19 = vector.multi_reduction <add>, %18, %cst_15 [1] : vector<16x256xf32> to vector<16xf32>
    %20 = vector.shape_cast %19 : vector<16xf32> to vector<16x1xf32>
    %cst_16 = arith.constant dense<0.000000e+00> : vector<16x1xf32>
    %21 = tpu.matmul %9, %20, %cst_16 {dimension_numbers = #tpu.dot_dimension_numbers<[1], [0], [0], [1], [0, 0, 1, 1], [], []>} : vector<16x16xf32>, vector<16x1xf32>, vector<16x1xf32> -> vector<16x1xf32>
    %cst_17 = arith.constant 9.99999974E-6 : f32
    %22 = vector.broadcast %cst_17 : f32 to vector<16x1xf32>
    %23 = arith.addf %21, %22 : vector<16x1xf32>
    %24 = math.rsqrt %23 : vector<16x1xf32>
    %25 = vector.broadcast %24 : vector<16x1xf32> to vector<16x256xf32>
    %26 = arith.mulf %17, %25 : vector<16x256xf32>
    %27 = vector.broadcast %1 : vector<16x1xf32> to vector<16x256xf32>
    %28 = arith.mulf %26, %27 : vector<16x256xf32>
    %29 = vector.broadcast %2 : vector<16x1xf32> to vector<16x256xf32>
    %30 = arith.addf %28, %29 : vector<16x256xf32>
    %cst_18 = arith.constant dense<0.000000e+00> : vector<256x256xf32>
    %31 = tpu.matmul %6, %30, %cst_18 {dimension_numbers = #tpu.dot_dimension_numbers<[0], [0], [1], [1], [0, 1, 1, 1], [], []>} : vector<16x256xf32>, vector<16x256xf32>, vector<256x256xf32> -> vector<256x256xf32>
    %cst_19 = arith.constant dense<0.000000e+00> : vector<128x256xf32>
    %32 = tpu.matmul %7, %30, %cst_19 {dimension_numbers = #tpu.dot_dimension_numbers<[0], [0], [1], [1], [0, 1, 1, 1], [], []>} : vector<16x128xf32>, vector<16x256xf32>, vector<128x256xf32> -> vector<128x256xf32>
    %33 = vector.extract_strided_slice %31 {offsets = [0, 0], sizes = [128, 256], strides = [1, 1]} : vector<256x256xf32> to vector<128x256xf32>
    %34 = vector.extract_strided_slice %31 {offsets = [128, 0], sizes = [128, 256], strides = [1, 1]} : vector<256x256xf32> to vector<128x256xf32>
    %cst_20 = arith.constant dense<0xFF800000> : vector<128xf32>
    %35 = vector.multi_reduction <maximumf>, %34, %cst_20 [1] : vector<128x256xf32> to vector<128xf32>
    %36 = vector.shape_cast %35 : vector<128xf32> to vector<128x1xf32>
    %37 = vector.broadcast %36 : vector<128x1xf32> to vector<128x256xf32>
    %38 = arith.subf %34, %37 : vector<128x256xf32>
    %39 = math.exp %38 : vector<128x256xf32>
    %cst_21 = arith.constant dense<0.000000e+00> : vector<128xf32>
    %40 = vector.multi_reduction <add>, %39, %cst_21 [1] : vector<128x256xf32> to vector<128xf32>
    %41 = vector.shape_cast %40 : vector<128xf32> to vector<128x1xf32>
    %cst_22 = arith.constant 1.000000e+00 : f32
    %42 = vector.broadcast %cst_22 : f32 to vector<128x1xf32>
    %43 = arith.divf %42, %41 : vector<128x1xf32>
    %44 = vector.extract_strided_slice %33 {offsets = [0, 0], sizes = [32, 256], strides = [1, 1]} : vector<128x256xf32> to vector<32x256xf32>
    %cst_23 = arith.constant dense<0xFF800000> : vector<256xf32>
    %45 = vector.multi_reduction <maximumf>, %44, %cst_23 [0] : vector<32x256xf32> to vector<256xf32>
    %46 = vector.shape_cast %45 : vector<256xf32> to vector<1x256xf32>
    %47 = vector.broadcast %46 : vector<1x256xf32> to vector<32x256xf32>
    %48 = arith.subf %44, %47 : vector<32x256xf32>
    %49 = math.exp %48 : vector<32x256xf32>
    %cst_24 = arith.constant dense<0.000000e+00> : vector<256xf32>
    %50 = vector.multi_reduction <add>, %49, %cst_24 [0] : vector<32x256xf32> to vector<256xf32>
    %51 = vector.shape_cast %50 : vector<256xf32> to vector<1x256xf32>
    %52 = tpu.reciprocal %51 {approx = true} : vector<1x256xf32> -> vector<1x256xf32>
    %53 = vector.broadcast %52 : vector<1x256xf32> to vector<32x256xf32>
    %54 = arith.mulf %49, %53 : vector<32x256xf32>
    %c0_25 = arith.constant 0 : index
    %c0_26 = arith.constant 0 : index
    %55 = vector.load %arg9[%c0_25, %c0_26] : memref<128x256xf32, #tpu.memory_space<vmem>>, vector<32x256xf32>
    tpu.vector_store %arg9[%c0_25, %c0_26], %54 {strides = array<i32>} : memref<128x256xf32, #tpu.memory_space<vmem>>, vector<32x256xf32>,
    %56 = vector.extract_strided_slice %33 {offsets = [32, 0], sizes = [32, 256], strides = [1, 1]} : vector<128x256xf32> to vector<32x256xf32>
    %cst_27 = arith.constant dense<0xFF800000> : vector<256xf32>
    %57 = vector.multi_reduction <maximumf>, %56, %cst_27 [0] : vector<32x256xf32> to vector<256xf32>
    %58 = vector.shape_cast %57 : vector<256xf32> to vector<1x256xf32>
    %59 = vector.broadcast %58 : vector<1x256xf32> to vector<32x256xf32>
    %60 = arith.subf %56, %59 : vector<32x256xf32>
    %61 = math.exp %60 : vector<32x256xf32>
    %cst_28 = arith.constant dense<0.000000e+00> : vector<256xf32>
    %62 = vector.multi_reduction <add>, %61, %cst_28 [0] : vector<32x256xf32> to vector<256xf32>
    %63 = vector.shape_cast %62 : vector<256xf32> to vector<1x256xf32>
    %64 = tpu.reciprocal %63 {approx = true} : vector<1x256xf32> -> vector<1x256xf32>
    %65 = vector.broadcast %64 : vector<1x256xf32> to vector<32x256xf32>
    %66 = arith.mulf %61, %65 : vector<32x256xf32>
    %c32 = arith.constant 32 : index
    %c0_29 = arith.constant 0 : index
    %67 = vector.load %arg9[%c32, %c0_29] : memref<128x256xf32, #tpu.memory_space<vmem>>, vector<32x256xf32>
    tpu.vector_store %arg9[%c32, %c0_29], %66 {strides = array<i32>} : memref<128x256xf32, #tpu.memory_space<vmem>>, vector<32x256xf32>,
    %68 = vector.extract_strided_slice %33 {offsets = [64, 0], sizes = [32, 256], strides = [1, 1]} : vector<128x256xf32> to vector<32x256xf32>
    %cst_30 = arith.constant dense<0xFF800000> : vector<256xf32>
    %69 = vector.multi_reduction <maximumf>, %68, %cst_30 [0] : vector<32x256xf32> to vector<256xf32>
    %70 = vector.shape_cast %69 : vector<256xf32> to vector<1x256xf32>
    %71 = vector.broadcast %70 : vector<1x256xf32> to vector<32x256xf32>
    %72 = arith.subf %68, %71 : vector<32x256xf32>
    %73 = math.exp %72 : vector<32x256xf32>
    %cst_31 = arith.constant dense<0.000000e+00> : vector<256xf32>
    %74 = vector.multi_reduction <add>, %73, %cst_31 [0] : vector<32x256xf32> to vector<256xf32>
    %75 = vector.shape_cast %74 : vector<256xf32> to vector<1x256xf32>
    %76 = tpu.reciprocal %75 {approx = true} : vector<1x256xf32> -> vector<1x256xf32>
    %77 = vector.broadcast %76 : vector<1x256xf32> to vector<32x256xf32>
    %78 = arith.mulf %73, %77 : vector<32x256xf32>
    %c64 = arith.constant 64 : index
    %c0_32 = arith.constant 0 : index
    %79 = vector.load %arg9[%c64, %c0_32] : memref<128x256xf32, #tpu.memory_space<vmem>>, vector<32x256xf32>
    tpu.vector_store %arg9[%c64, %c0_32], %78 {strides = array<i32>} : memref<128x256xf32, #tpu.memory_space<vmem>>, vector<32x256xf32>,
    %80 = vector.extract_strided_slice %33 {offsets = [96, 0], sizes = [32, 256], strides = [1, 1]} : vector<128x256xf32> to vector<32x256xf32>
    %cst_33 = arith.constant dense<0xFF800000> : vector<256xf32>
    %81 = vector.multi_reduction <maximumf>, %80, %cst_33 [0] : vector<32x256xf32> to vector<256xf32>
    %82 = vector.shape_cast %81 : vector<256xf32> to vector<1x256xf32>
    %83 = vector.broadcast %82 : vector<1x256xf32> to vector<32x256xf32>
    %84 = arith.subf %80, %83 : vector<32x256xf32>
    %85 = math.exp %84 : vector<32x256xf32>
    %cst_34 = arith.constant dense<0.000000e+00> : vector<256xf32>
    %86 = vector.multi_reduction <add>, %85, %cst_34 [0] : vector<32x256xf32> to vector<256xf32>
    %87 = vector.shape_cast %86 : vector<256xf32> to vector<1x256xf32>
    %88 = tpu.reciprocal %87 {approx = true} : vector<1x256xf32> -> vector<1x256xf32>
    %89 = vector.broadcast %88 : vector<1x256xf32> to vector<32x256xf32>
    %90 = arith.mulf %85, %89 : vector<32x256xf32>
    %c96 = arith.constant 96 : index
    %c0_35 = arith.constant 0 : index
    %91 = vector.load %arg9[%c96, %c0_35] : memref<128x256xf32, #tpu.memory_space<vmem>>, vector<32x256xf32>
    tpu.vector_store %arg9[%c96, %c0_35], %90 {strides = array<i32>} : memref<128x256xf32, #tpu.memory_space<vmem>>, vector<32x256xf32>,
    %cst_36 = arith.constant dense<0.000000e+00> : vector<128x128xf32>
    %92 = tpu.matmul %39, %32, %cst_36 {dimension_numbers = #tpu.dot_dimension_numbers<[1], [1], [0], [0], [0, 0, 1, 0], [], []>} : vector<128x256xf32>, vector<128x256xf32>, vector<128x128xf32> -> vector<128x128xf32>
    %93 = arith.mulf %92, %10 : vector<128x128xf32>
    %94 = vector.broadcast %43 : vector<128x1xf32> to vector<128x128xf32>
    %95 = arith.mulf %93, %94 : vector<128x128xf32>
    %c0_37 = arith.constant 0 : index
    %c0_38 = arith.constant 0 : index
    %96 = vector.load %arg9[%c0_37, %c0_38] : memref<128x256xf32, #tpu.memory_space<vmem>>, vector<128x256xf32>
    %cst_39 = arith.constant dense<0.000000e+00> : vector<128x256xf32>
    %97 = tpu.matmul %95, %96, %cst_39 {dimension_numbers = #tpu.dot_dimension_numbers<[0], [0], [1], [1], [0, 1, 1, 1], [], []>} : vector<128x128xf32>, vector<128x256xf32>, vector<128x256xf32> -> vector<128x256xf32>
    %cst_40 = arith.constant dense<0.000000e+00> : vector<16x256xf32>
    %98 = tpu.matmul %8, %97, %cst_40 {dimension_numbers = #tpu.dot_dimension_numbers<[1], [0], [0], [1], [0, 0, 1, 1], [], []>} : vector<16x128xf32>, vector<128x256xf32>, vector<16x256xf32> -> vector<16x256xf32>
    %99 = vector.broadcast %3 : vector<16x1xf32> to vector<16x256xf32>
    %100 = arith.addf %98, %99 : vector<16x256xf32>
    %101 = vector.shape_cast %100 : vector<16x256xf32> to vector<1x16x256xf32>
    %cst_41 = arith.constant dense<0.000000e+00> : vector<1xf32>
    %102 = vector.multi_reduction <add>, %101, %cst_41 [1, 2] : vector<1x16x256xf32> to vector<1xf32>
    %103 = vector.shape_cast %102 : vector<1xf32> to vector<1x1x1xf32>
    %104 = vector.extract %103[0, 0, 0] : f32 from vector<1x1x1xf32>
    %cst_42 = arith.constant 4.096000e+03 : f32
    %105 = arith.divf %104, %cst_42 : f32
    %106 = vector.broadcast %105 : f32 to vector<16x256xf32>
    %107 = arith.subf %100, %106 : vector<16x256xf32>
    %108 = arith.mulf %107, %107 : vector<16x256xf32>
    %109 = vector.shape_cast %108 : vector<16x256xf32> to vector<1x16x256xf32>
    %cst_43 = arith.constant dense<0.000000e+00> : vector<1xf32>
    %110 = vector.multi_reduction <add>, %109, %cst_43 [1, 2] : vector<1x16x256xf32> to vector<1xf32>
    %111 = vector.shape_cast %110 : vector<1xf32> to vector<1x1x1xf32>
    %112 = vector.extract %111[0, 0, 0] : f32 from vector<1x1x1xf32>
    %cst_44 = arith.constant 4.096000e+03 : f32
    %113 = arith.divf %112, %cst_44 : f32
    %cst_45 = arith.constant 9.99999974E-6 : f32
    %114 = arith.addf %113, %cst_45 : f32
    %115 = math.rsqrt %114 : f32
    %116 = vector.broadcast %115 : f32 to vector<16x256xf32>
    %117 = arith.mulf %107, %116 : vector<16x256xf32>
    %118 = vector.broadcast %4 : vector<16x1xf32> to vector<16x256xf32>
    %119 = arith.mulf %117, %118 : vector<16x256xf32>
    %120 = vector.broadcast %5 : vector<16x1xf32> to vector<16x256xf32>
    %121 = arith.addf %119, %120 : vector<16x256xf32>
    %c0_46 = arith.constant 0 : index
    %c0_47 = arith.constant 0 : index
    %c0_48 = arith.constant 0 : index
    %122 = vector.load %arg8[%c0_46, %c0_47, %c0_48] : memref<1x16x256xf32, #tpu.memory_space<vmem>>, vector<1x16x256xf32>
    %123 = vector.shape_cast %122 : vector<1x16x256xf32> to vector<16x256xf32>
    %124 = vector.shape_cast %121 : vector<16x256xf32> to vector<1x16x256xf32>
    tpu.vector_store %arg8[%c0_46, %c0_47, %c0_48], %124 {strides = array<i32>} : memref<1x16x256xf32, #tpu.memory_space<vmem>>, vector<1x16x256xf32>,
    return
  }
  func.func @transform_0(%arg0: i32) -> (i32, i32, i32) {
    %c0_i32 = arith.constant 0 : i32
    %c0_i32_0 = arith.constant 0 : i32
    %c0_i32_1 = arith.constant 0 : i32
    return %arg0, %c0_i32, %c0_i32_0 : i32, i32, i32
  }
  func.func @transform_1(%arg0: i32) -> (i32, i32) {
    %c0_i32 = arith.constant 0 : i32
    %c0_i32_0 = arith.constant 0 : i32
    %c0_i32_1 = arith.constant 0 : i32
    return %c0_i32, %c0_i32_0 : i32, i32
  }
  func.func @transform_2(%arg0: i32) -> (i32, i32) {
    %c0_i32 = arith.constant 0 : i32
    %c0_i32_0 = arith.constant 0 : i32
    %c0_i32_1 = arith.constant 0 : i32
    return %c0_i32, %c0_i32_0 : i32, i32
  }
  func.func @transform_3(%arg0: i32) -> (i32, i32) {
    %c0_i32 = arith.constant 0 : i32
    %c0_i32_0 = arith.constant 0 : i32
    %c0_i32_1 = arith.constant 0 : i32
    return %c0_i32, %c0_i32_0 : i32, i32
  }
  func.func @transform_4(%arg0: i32) -> (i32, i32) {
    %c0_i32 = arith.constant 0 : i32
    %c0_i32_0 = arith.constant 0 : i32
    %c0_i32_1 = arith.constant 0 : i32
    return %c0_i32, %c0_i32_0 : i32, i32
  }
  func.func @transform_5(%arg0: i32) -> (i32, i32) {
    %c0_i32 = arith.constant 0 : i32
    %c0_i32_0 = arith.constant 0 : i32
    %c0_i32_1 = arith.constant 0 : i32
    return %c0_i32, %c0_i32_0 : i32, i32
  }
  func.func @transform_6(%arg0: i32) -> (i32, i32) {
    %c0_i32 = arith.constant 0 : i32
    %c0_i32_0 = arith.constant 0 : i32
    %c0_i32_1 = arith.constant 0 : i32
    return %c0_i32, %c0_i32_0 : i32, i32
  }
  func.func @transform_7(%arg0: i32) -> (i32, i32, i32) {
    %c0_i32 = arith.constant 0 : i32
    %c0_i32_0 = arith.constant 0 : i32
    %c0_i32_1 = arith.constant 0 : i32
    return %arg0, %c0_i32, %c0_i32_0 : i32, i32, i32
  }
}

</mosaic_0001>

<bundles_post_ra>
// kernel: tpu_custom_call.1
= control target key start
LH: loop header
LB: loop body
LE: loop exit
PB: predicated region body
PF: predicated region fallthrough
CT: control target
= control target key end

     0   :  { %s4120_s0 = inlined_call_operand.hbm [shape: f32[2,16,256], index: 0, kind: input, shape index: {}]   ;;  %s4121_s1 = inlined_call_operand.vmem [shape: f32[16,8], index: 1, kind: input, shape index: {}]   ;;  %s4122_s2 = inlined_call_operand.hbm [shape: f32[16,256], index: 2, kind: input, shape index: {}]   ;;  %s4123_s3 = inlined_call_operand.vmem [shape: f32[16,128], index: 3, kind: input, shape index: {}]   ;;  %s4124_s4 = inlined_call_operand.vmem [shape: f32[16,128], index: 4, kind: input, shape index: {}]   ;;  %s4125_s5 = inlined_call_operand.hbm [shape: f32[16,16], index: 5, kind: input, shape index: {}]   ;;  %s4126_s6 = inlined_call_operand.hbm [shape: f32[128,128], index: 6, kind: input, shape index: {}]   ;;  %s4127_s7 = inlined_call_operand.hbm [shape: f32[2,16,256], index: 7, kind: output, shape index: {}]  }
   0x1   :  { %4158 = sst [smem:[#allocation32_spill]] %s4122_s2 }
   0x2   :  { %12 = vsyncpa [#allocation4], 0 }
   0x3   :  { %14 = vsyncpa [#allocation4 + $0x1], 0 }
   0x4   :  { %15 = vsyncpa [#allocation7], 0 }
   0x5   :  { %16 = vsyncpa [#allocation10], 0 }
   0x6   :  { %17 = vsyncpa [#allocation5], 0 }
   0x7   :  { %19 = vsyncpa [#allocation5 + $0x1], 0  ;;  %s3220_s24 = smov 0   ;;  %s3222_s25 = smov 0  }
   0x8   :  { %s3224_s26 = smov 0   ;;  %s3226_s27 = smov 0  }
   0x9 LB: > { %s3241_s28 = sadd.s32 4294967295, %s3161_s27   ;;  %s2475_s29 = sadd.s32 4294967294, %s3161_s27   ;;  %s3161_s27 = sphi %s3226_s27, %s4221_s27   ;;  %s3157_s26 = sphi %s3224_s26, %s4220_s26   ;;  %s3153_s25 = sphi %s3222_s25, %s4219_s25   ;;  %s3149_s24 = sphi %s3220_s24, %s4218_s24  }
   0xa   : > { %p45_p0 = scmp.ne.s32.totalorder %s3153_s25, %s3149_s24  ;;  %p4128_p1 = scmp.eq.s32.totalorder %s3241_s28, 0 }
   0xb   : > { %p201_p3 = scmp.eq.s32.totalorder %s2475_s29, 1  ;;  %p2476_p5 = scmp.ge.s32.totalorder %s3161_s27, 1 }
   0xc   : > { %p3250_p4 = por %p4128_p1, %p45_p0  ;;  %p208_p7 = scmp.lt.s32.totalorder %s3161_s27, 3 }
   0xd   : > { %p3255_p6 = por %p201_p3, %p45_p0  ;;  %s3163_s10 = smov [#allocation6]  }
   0xe   : > { %s4159_s30 = scalar_select %p3250_p4, 1, 0 }
   0xf   : > { %s4160_s8 = scalar_select %p3255_p6, 1, 0 }
  0x10   : > { %p3260_p8 = pnand %p2476_p5, %p208_p7  ;;  %s223_s11 = sshll.u32 %s3163_s10, 4  ;;  %s3264_s11 = int_to_ptr.vmem [resolvable:$true] %s223_s11 }
  0x11   : > { %4161 = sst [smem:[#allocation16_spill]] %s4160_s8  ;;  %s3164_s13 = smov [#allocation8]  }
  0x12   : > { %s4162_s9 = scalar_select %p3260_p8, 1, 0 }
  0x13   : > { %p2707_p9 = pneg %p3260_p8  ;;  %s242_s14 = sshll.u32 %s3164_s13, 4  ;;  %s3275_s14 = int_to_ptr.vmem [resolvable:$true] %s242_s14 }
  0x14   : > { %s4164_s2 = sld [smem:[#allocation32_spill]] }
  0x15   : > { %p3271_p11 = pnand %p2707_p9, %p4128_p1 }
  0x17   : > { %p3285_p13 = pneg %p3271_p11 }
  0x1a   : > { %s2973_s17 = scalar_lea.hbm %s4164_s2, 512 }
  0x1b   : > { %p2974_p12 = scmp.ne.s32.totalorder %s4164_s2, %s2973_s17  ;;  %p2980_p5 = scmp.lt.u32.totalorder %s2973_s17, %s4164_s2 }
  0x1d   : > { %p2976_p0 = pnand %p3285_p13, %p2974_p12 }
  0x1f   : > { %p2977_p3 = pneg %p2976_p0 }
  0x21   : > { %p2982_p7 = pnand %p2980_p5, %p2977_p3 }
  0x23   : > { %2985 = shalt.err (!%p2982_p7)
}
  0x24   : > { %s2986_s23 = scalar_lea.vmem %s3264_s11, 512  ;;  %p2994_p2 = scmp.lt.s32.totalorder %s3264_s11, %s3264_s11 }
  0x25   : > { %p2987_p9 = scmp.ne.s32.totalorder %s3264_s11, %s2986_s23  ;;  %p2995_p6 = scmp.lt.s32.totalorder %s2986_s23, %s2986_s23 }
  0x27   : > { %p2989_p10 = pnand %p2987_p9, %p3285_p13  ;;  %p2996_p12 = por %p2995_p6, %p2994_p2 }
  0x29   : > { %p2990_p1 = pneg %p2989_p10 }
  0x2b   : > { %p2997_p0 = pnand %p2996_p12, %p2990_p1 }
  0x2d   : > { %3000 = shalt.err (!%p2997_p0)
}
  0x2e   : > { %s4129_s29 = smov 256   ;;  %s4130_s10 = smov 16  }
  0x2f   : > { %2710 = dma.hbm_to_vmem [thread:$0]  (!%p3271_p11), %s4164_s2, 512, %s3264_s11, [#allocation7], %s4129_s29, %s4129_s29, %s4130_s10  }
  0x30   : > { %s3001_s18 = scalar_lea.hbm %s4125_s5, 256 }
  0x31   : > { %p3002_p1 = scmp.ne.s32.totalorder %s4125_s5, %s3001_s18  ;;  %p3008_p10 = scmp.lt.u32.totalorder %s3001_s18, %s4125_s5 }
  0x33   : > { %p3004_p2 = pnand %p3002_p1, %p3285_p13 }
  0x35   : > { %p3005_p6 = pneg %p3004_p2 }
  0x37   : > { %p3010_p3 = pnand %p3008_p10, %p3005_p6 }
  0x39   : > { %3013 = shalt.err (!%p3010_p3)
}
  0x3a   : > { %s3014_s11 = scalar_lea.vmem %s3275_s14, 256  ;;  %p3022_p12 = scmp.lt.s32.totalorder %s3275_s14, %s3275_s14 }
  0x3b   : > { %p3015_p5 = scmp.ne.s32.totalorder %s3275_s14, %s3014_s11  ;;  %p3023_p0 = scmp.lt.s32.totalorder %s3014_s11, %s3014_s11 }
  0x3d   : > { %p3017_p7 = pnand %p3015_p5, %p3285_p13  ;;  %p3024_p1 = por %p3023_p0, %p3022_p12 }
  0x3f   : > { %p3018_p9 = pneg %p3017_p7 }
  0x41   : > { %p3025_p2 = pnand %p3024_p1, %p3018_p9 }
  0x43   : > { %3028 = shalt.err (!%p3025_p2)
}
  0x44   : > { %s3167_s13 = smov 128   ;;  %s3168_s15 = smov 8  }
  0x45   : > { %2713 = dma.hbm_to_vmem [thread:$0]  (!%p3271_p11), %s4125_s5, 256, %s3275_s14, [#allocation7], %s3167_s13, %s3167_s13, %s3168_s15  }
  0x46   : > { %s3169_s18 = smov [#allocation9]   ;;  %s3333_s21 = sadd.s32 1, %s3161_s27  }
  0x47   : > { %s255_s19 = sshll.u32 %s3169_s18, 4  ;;  %s3029_s11 = scalar_lea.hbm %s4126_s6, 2048  ;;  %s256_s19 = int_to_ptr.vmem [resolvable:$true] %s255_s19 }
  0x48   : > { %p3030_p6 = scmp.ne.s32.totalorder %s4126_s6, %s3029_s11  ;;  %p3036_p5 = scmp.lt.u32.totalorder %s3029_s11, %s4126_s6 }
  0x4a   : > { %p3032_p10 = pnand %p3030_p6, %p3285_p13 }
  0x4c   : > { %p3033_p3 = pneg %p3032_p10 }
  0x4e   : > { %p3038_p7 = pnand %p3036_p5, %p3033_p3 }
  0x50   : > { %3041 = shalt.err (!%p3038_p7)
}
  0x51   : > { %s3042_s14 = scalar_lea.vmem %s256_s19, 2048  ;;  %p3050_p1 = scmp.lt.s32.totalorder %s256_s19, %s256_s19 }
  0x52   : > { %p3043_p9 = scmp.ne.s32.totalorder %s256_s19, %s3042_s14  ;;  %p3051_p2 = scmp.lt.s32.totalorder %s3042_s14, %s3042_s14 }
  0x54   : > { %p3045_p12 = pnand %p3043_p9, %p3285_p13  ;;  %p3052_p4 = por %p3051_p2, %p3050_p1 }
  0x56   : > { %p3046_p0 = pneg %p3045_p12 }
  0x58   : > { %p3053_p8 = pnand %p3052_p4, %p3046_p0 }
  0x5a   : > { %3056 = shalt.err (!%p3053_p8)
}
  0x5b   : > { %2716 = dma.hbm_to_vmem [thread:$0]  (!%p3271_p11), %s4126_s6, 2048, %s256_s19, [#allocation10], %s3167_s13, %s3167_s13, %s3168_s15  }
  0x5c   : > { %s29_s2 = ssub.s32 %s3161_s27, %s3333_s21  ;;  %s32_s8 = sadd.s32 1, %s3157_s26 }
  0x5d   : > { %p30_p4 = scmp.eq.s32.totalorder %s29_s2, 0  ;;  %p39_p8 = scmp.ne.s32.totalorder %s3157_s26, %s3153_s25 }
  0x5e   : > { %p40_p13 = scmp.eq.s32.totalorder %s3161_s27, 0  ;;  %p2728_p6 = scmp.lt.s32.totalorder %s3161_s27, 2 }
  0x5f   : > { %s3361_s12 = scalar_select %p30_p4, %s3157_s26, %s32_s8  }
  0x60   : > { %p41_p10 = por %p40_p13, %p39_p8  ;;  %p4166_p3 = scmp.eq.s32.totalorder %s3241_s28, 1 }
  0x61   : > { %s269_s16 = sand.u32 1, %s3157_s26   ;;  %s2547_s17 = sshll.u32 %s3161_s27, 9 }
  0x62   : > { %p3365_p5 = por %p4166_p3, %p39_p8  ;;  %s2481_s18 = sshll.u32 %s269_s16, 5 }
  0x63   : > { %s3374_s13 = scalar_lea.hbm %s4120_s0, %s2547_s17  ;;  %s273_s15 = scalar_lea.vmem [#allocation3], %s2481_s18 }
  0x64   : > { %s280_s19 = sshll.u32 %s273_s15, 4  ;;  %p3376_p11 = pnand %p2728_p6, %p41_p10  ;;  %s3380_s19 = int_to_ptr.vmem [resolvable:$true] %s280_s19 }
  0x65   : > { %s3382_s14 = scalar_lea.sflag [#allocation4], %s269_s16  ;;  %s3057_s29 = scalar_lea.hbm %s3374_s13, 512 }
  0x66   : > { %p3058_p7 = scmp.ne.s32.totalorder %s3374_s13, %s3057_s29  ;;  %p3059_p9 = pneg %p3376_p11 }
  0x67   : > { %s3062_s8 = scalar_lea.hbm %s4120_s0, 1024  ;;  %p3063_p1 = scmp.lt.u32.totalorder %s3374_s13, %s4120_s0 }
  0x68   : > { %p3060_p12 = pnand %p3059_p9, %p3058_p7  ;;  %p3064_p2 = scmp.lt.u32.totalorder %s3062_s8, %s3057_s29 }
  0x69   : > { %p3066_p8 = scmp.lt.u32.totalorder %s3057_s29, %s3374_s13 }
  0x6a   : > { %p3061_p0 = pneg %p3060_p12  ;;  %p3065_p4 = por %p3064_p2, %p3063_p1 }
  0x6c   : > { %p3067_p13 = por %p3066_p8, %p3065_p4 }
  0x6e   : > { %p3068_p6 = pnand %p3067_p13, %p3061_p0 }
  0x70   : > { %3071 = shalt.err (!%p3068_p6)
}
  0x71   : > { %s3072_s16 = scalar_lea.vmem %s3380_s19, 512  ;;  %s3170_s22 = smov [#allocation3]  }
  0x72   : > { %p3073_p10 = scmp.ne.s32.totalorder %s3380_s19, %s3072_s16  ;;  %s3077_s23 = sshll.u32 %s3170_s22, 4  ;;  %s3078_s23 = int_to_ptr.vmem [resolvable:$false] %s3077_s23 }
  0x73   : > { %s3079_s15 = scalar_lea.vmem %s3078_s23, 1024  ;;  %p3080_p12 = scmp.lt.s32.totalorder %s3380_s19, %s3078_s23 }
  0x74   : > { %p3075_p3 = pnand %p3073_p10, %p3059_p9  ;;  %p3081_p1 = scmp.lt.s32.totalorder %s3079_s15, %s3072_s16 }
  0x76   : > { %p3076_p7 = pneg %p3075_p3  ;;  %p3082_p2 = por %p3081_p1, %p3080_p12 }
  0x78   : > { %p3083_p4 = pnand %p3082_p2, %p3076_p7 }
  0x7a   : > { %3086 = shalt.err (!%p3083_p4)
}
  0x7b   : > { %s4169_s29 = smov 16   ;;  %s4170_s10 = smov 256  }
  0x7c   : > { %2720 = dma.hbm_to_vmem [thread:$0]  (!%p3376_p11), %s3374_s13, 512, %s3380_s19, %s3382_s14, %s4170_s10, %s4170_s10, %s4169_s29  }
  0x7d   : > { %p4171_p9 = scmp.ne.s32.totalorder %s4162_s9, 0 }
  0x7f   : > { %292 = sbr.rel (%p4171_p9) target bundleno = 2996 (0xbb4), region = 48 }
  0x86   : > { %s3416_s2 = sand.u32 1, %s3153_s25   ;;  %p4172_p0 = scmp.ne.s32.totalorder %s4159_s30, 0 }
  0x87   : > { %s2485_s8 = sshll.u32 %s3416_s2, 5  ;;  %s295_s17 = scalar_lea.sflag [#allocation4], %s3416_s2 }
  0x88   : > { %s298_s11 = scalar_lea.vmem [#allocation3], %s2485_s8 }
  0x89   : > { %3132 = dma.done.wait (%p4172_p0), %s295_s17, 512  }
  0x8a   : > { %3134 = vsyncadd (%p4172_p0), %s295_s17, 4294966784  ;;  %p4173_p11 = scmp.eq.s32.totalorder %s3241_s28, 0 }
  0x8c   : > { %3136 = dma.done.wait (%p4173_p11), [#allocation7], 768   ;;  %p4174_p8 = pmov %p4173_p11 }
  0x8e   : > { %3138 = vsyncadd (%p4174_p8), [#allocation7], 4294966528  ;;  %p4175_p13 = pmov %p4174_p8 }
  0x8f   : > { %p4176_p6 = pmov %p4174_p8 }
  0x90   : > { %3140 = dma.done.wait (%p4175_p13), [#allocation10], 2048  }
  0x91   : > { %3142 = vsyncadd (%p4176_p6), [#allocation10], 4294965248  ;;  %v369_v0 = vld [vmem:[%s298_s11] sm:$0xff]  ;;  %v370_v1 = vld [vmem:[%s298_s11 + $0x8] sm:$0xff]  ;;  %vm379_vm0 = vcmask 130048   ;;  %v3171_v11 = vmov 0  }
  0x92   : > { %v371_v2 = vld [vmem:[%s298_s11 + $0x10] sm:$0xff]  ;;  %v373_v3 = vadd.f32 %v370_v1, %v369_v0  ;;  %v372_v4 = vld [vmem:[%s298_s11 + $0x18] sm:$0xff]  ;;  %v351_v6 = vld [vmem:[#allocation8] sm:$0xff]  ;;  %2780 = vset.pattern.permute.xlu1 %v3171_v11  ;;  %2781 = vset.pattern.permute.xlu0 %v3171_v11  ;;  %v3172_v30 = vmov 1   ;;  %v4134_v41 = vmov 0.0   ;;  %s340_s23 = scalar_lea.vmem [#allocation11], %s2485_s8 }
  0x93   : > { %v376_v5 = vadd.f32 %v372_v4, %v371_v2  ;;  %2561 = vmatprep.mubr.msk.f32.mxu0 %vm379_vm0, %v351_v6  ;;  %2568 = vmatprep.mubr.msk.f32.mxu1 %vm379_vm0, %v351_v6  ;;  %v352_v10 = vld [vmem:[#allocation8 + $0x8] sm:$0xff]  ;;  %v341_v29 = vld [vmem:[%s4121_s1] sm:$0xff]  ;;  %v346_v39 = vld [vmem:[#allocation6 + $0x18] sm:$0xff]  ;;  %s2373_s15 = sshll.u32 %s340_s23, 4  ;;  %s2548_s29 = sshll.u32 %s3241_s28, 9  ;;  %s4071_s15 = int_to_ptr.vmem [resolvable:$true] %s2373_s15 }
  0x94   : > { %374 = vadd.xlane.f32.xlu0 %v373_v3  ;;  %v342_v31 = vld [vmem:[%s4121_s1 + $0x8] sm:$0xff]  ;;  %v343_v40 = vld [vmem:[#allocation6] sm:$0xff]  ;;  %v345_v42 = vld [vmem:[#allocation6 + $0x10] sm:$0xff]  ;;  %s4076_s8 = scalar_lea.hbm %s4127_s7, %s2548_s29  ;;  %s2360_s28 = scalar_lea.sflag [#allocation5], %s3416_s2 }
  0x95   : > { %v344_v38 = vld [vmem:[#allocation6 + $0x8] sm:$0xff]  ;;  %v347_v43 = vld [vmem:[%s4123_s3] sm:$0xff]  ;;  %s3087_s11 = scalar_lea.vmem %s4071_s15, 512  ;;  %s3177_s30 = smov [#allocation11]  }
  0x96   : > { %v348_v44 = vld [vmem:[%s4123_s3 + $0x8] sm:$0xff]  ;;  %p3088_p10 = scmp.ne.s32.totalorder %s4071_s15, %s3087_s11  ;;  %s3091_s9 = sshll.u32 %s3177_s30, 4  ;;  %s3092_s9 = int_to_ptr.vmem [resolvable:$false] %s3091_s9 }
  0x97   : > { %p3094_p12 = scmp.lt.s32.totalorder %s4071_s15, %s3092_s9 }
  0x98   : > { %377 = vadd.xlane.f32.xlu0 %v376_v5  ;;  %p3089_p3 = pnand %p3088_p10, %p3365_p5 }
  0x9a   : > { %p3090_p7 = pneg %p3089_p3 }
 0x121   : > { %v375_v7 = vpop.xlane.xlu0 %374 }
 0x125   : > { %v378_v8 = vpop.xlane.xlu0 %377 }
 0x126   : > { %v2571_v9 = vpack.c.bf16 %v378_v8, %v375_v7 }
 0x128   : > { %2572 = vmatprep.subr.bf16.mxu0 %v2571_v9 }
 0x129   : > { %2574 = vmatpush3.bf16.msra.mxu0 %v2571_v9 }
 0x12c   : > { %2562 = vmatmul.mubr.msk.f32.vlgmr.msra.gmra.mrb[0].mxu0 %vm379_vm0, %v352_v10 }
 0x12d   : > { %826 = vmatprep.mubr.f32.mxu0 %v4134_v41 }
 0x1ff   : > { %v2563_v12 = vpop.f32.mrb[0].mxu0 }
 0x200   : > { %v452_v13 = vpop.f32.mrb[1].mxu0 }
 0x201   : > { %463 = vperm.xlu1 %2780, %v452_v13  }
 0x205   : > { %468 = vperm.xlu1 %2780, %v2563_v12  }
 0x209   : > { %2782 = vset.pattern.permute.xlu1 %v3172_v30 }
 0x280   : > { %v464_v14 = vpop.permute.xlu1 %463 }
 0x281   : > { %v471_v15 = vsub.f32 %v369_v0, %v464_v14  ;;  %v472_v16 = vsub.f32 %v370_v1, %v464_v14 }
 0x283   : > { %v475_v17 = vmul.f32 %v471_v15, %v471_v15  ;;  %v476_v18 = vmul.f32 %v472_v16, %v472_v16 }
 0x284   : > { %v469_v19 = vpop.permute.xlu1 %468 }
 0x285   : > { %v473_v20 = vsub.f32 %v371_v2, %v469_v19  ;;  %v474_v21 = vsub.f32 %v372_v4, %v469_v19  ;;  %v479_v22 = vadd.f32 %v476_v18, %v475_v17 }
 0x287   : > { %480 = vadd.xlane.f32.xlu0 %v479_v22  ;;  %v477_v23 = vmul.f32 %v473_v20, %v473_v20  ;;  %v478_v24 = vmul.f32 %v474_v21, %v474_v21 }
 0x289   : > { %v482_v25 = vadd.f32 %v478_v24, %v477_v23 }
 0x28b   : > { %483 = vadd.xlane.f32.xlu1 %v482_v25 }
 0x29c   : > { %591 = vperm.xlu1 %2782, %v341_v29  }
 0x29d   : > { %578 = vperm.xlu0 %2781, %v341_v29  }
 0x2a0   : > { %2783 = vset.pattern.permute.xlu1 %v3171_v11 }
 0x2a1   : > { %583 = vperm.xlu0 %2781, %v342_v31  }
 0x314   : > { %v481_v26 = vpop.xlane.xlu0 %480 }
 0x318   : > { %v484_v27 = vpop.xlane.xlu1 %483 }
 0x319   : > { %v2575_v28 = vpack.c.bf16 %v484_v27, %v481_v26 }
 0x31b   : > { %2576 = vmatprep.subr.bf16.mxu1 %v2575_v28 }
 0x31c   : > { %2578 = vmatpush3.bf16.msra.mxu1 %v2575_v28  ;;  %v579_v45 = vpop.permute.xlu0 %578  ;;  %v592_v46 = vpop.permute.xlu1 %591 }
 0x31f   : > { %2569 = vmatmul.mubr.msk.f32.vlgmr.msra.gmra.mrb[0].mxu1 %vm379_vm0, %v352_v10 }
 0x320   : > { %976 = vmatprep.mubr.f32.mxu1 %v4134_v41  ;;  %v584_v47 = vpop.permute.xlu0 %583 }
 0x3f2   : > { %v2570_v32 = vpop.f32.mrb[0].mxu1 }
 0x3f3   : > { %v557_v33 = vadd.f32 1e-05, %v2570_v32  ;;  %v551_v34 = vpop.f32.mrb[1].mxu1 }
 0x3f4   : > { %v552_v35 = vadd.f32 1e-05, %v551_v34 }
 0x3f5   : > { %2789 = vrsqrt.f32 %v557_v33 }
 0x3f6   : > { %2791 = vrsqrt.f32 %v552_v35 }
 0x3ff   : > { %v2790_v36 = vpop.eup %2789 }
 0x400   : > { %v2792_v37 = vpop.eup %2791  ;;  %569 = vperm.xlu1 %2783, %v2790_v36  }
 0x401   : > { %564 = vperm.xlu0 %2781, %v2792_v37  }
 0x405   : > { %2784 = vset.pattern.permute.xlu0 %v3172_v30 }
 0x406   : > { %595 = vperm.xlu0 %2784, %v342_v31  }
 0x424   : > { %634 = vxpose.xlu0.b32.start [1/2] (short) %v344_v38, 128 }
 0x428   : > { %635 = vxpose.xlu0.b32.end [2/2] (short) %v346_v39, 128 }
 0x429   : > { %602 = vxpose.xlu1.b32.start [1/2] (short) %v343_v40, 128 }
 0x42d   : > { %603 = vxpose.xlu1.b32.end [2/2] (short) %v345_v42, 128 }
 0x461   : > { %1019 = vxpose.xlu0.b32.start [1/2] (short) %v347_v43, 128 }
 0x465   : > { %1020 = vxpose.xlu0.b32.end [2/2] (short) %v348_v44, 128 }
 0x47f   : > { %v570_v48 = vpop.permute.xlu1 %569 }
 0x480   : > { %v574_v49 = vmul.f32 %v570_v48, %v473_v20  ;;  %v575_v50 = vmul.f32 %v570_v48, %v474_v21  ;;  %v565_v51 = vpop.permute.xlu0 %564 }
 0x481   : > { %v572_v52 = vmul.f32 %v565_v51, %v471_v15  ;;  %v573_v53 = vmul.f32 %v565_v51, %v472_v16 }
 0x482   : > { %v588_v56 = vmul.f32 %v584_v47, %v574_v49  ;;  %v589_v57 = vmul.f32 %v584_v47, %v575_v50 }
 0x483   : > { %v586_v54 = vmul.f32 %v579_v45, %v572_v52  ;;  %v587_v55 = vmul.f32 %v579_v45, %v573_v53 }
 0x485   : > { %v598_v58 = vadd.f32 %v592_v46, %v586_v54  ;;  %v599_v59 = vadd.f32 %v592_v46, %v587_v55  ;;  %v596_v60 = vpop.permute.xlu0 %595 }
 0x486   : > { %v600_v61 = vadd.f32 %v596_v60, %v588_v56  ;;  %v601_v62 = vadd.f32 %v596_v60, %v589_v57 }
 0x488   : > { %v2579_v63 = vpack.c.bf16 %v601_v62, %v599_v59  ;;  %v2581_v0 = vpack.c.bf16 %v600_v61, %v598_v58 }
 0x48a   : > { %2580 = vmatprep.subr.bf16.mxu0 %v2579_v63  ;;  %2683 = vmatprep.subr.bf16.mxu1 %v2579_v63 }
 0x48b   : > { %2582 = vmatpush1.bf16.msra.mxu0 %v2581_v0  ;;  %2684 = vmatpush1.bf16.msra.mxu1 %v2581_v0 }
 0x48c   : > { %2584 = vmatprep.subr.bf16.mxu1 %v2579_v63 }
 0x4a4   : > { %v3452_v1 = vpop.trf.xlu0 }
 0x4a8   : > { %v3454_v2 = vpop.trf.xlu0 }
 0x4a9   : > { %v618_v3 = vpop.trf.xlu1 }
 0x4aa   : > { %2494 = vmatmul.mubr.msk.f32.vlgmr.msra.gmra.mrb[2].mxu0 %vm379_vm0, %v618_v3 }
 0x4ab   : > { %832 = vmatprep.mubr.f32.mxu0 %v4134_v41 }
 0x4ac   : > { %v3458_v4 = vpop.trf.xlu0 }
 0x4ad   : > { %v619_v5 = vpop.trf.xlu1 }
 0x4ae   : > { %2495 = vmatmul.mubr.msk.f32.gmra.mrb[4].mxu0 %vm379_vm0, %v619_v5 }
 0x4af   : > { %838 = vmatprep.mubr.f32.mxu0 %v4134_v41 }
 0x4b0   : > { %v3462_v6 = vpop.trf.xlu0 }
 0x4b1   : > { %v620_v7 = vpop.trf.xlu1 }
 0x4b2   : > { %2496 = vmatmul.mubr.msk.f32.gmra.mrb[6].mxu0 %vm379_vm0, %v620_v7 }
 0x4b3   : > { %844 = vmatprep.mubr.f32.mxu0 %v4134_v41 }
 0x4b4   : > { %v3466_v8 = vpop.trf.xlu0 }
 0x4b5   : > { %v621_v9 = vpop.trf.xlu1 }
 0x4b6   : > { %2497 = vmatmul.mubr.msk.f32.gmra.mrb[8].mxu0 %vm379_vm0, %v621_v9 }
 0x4b7   : > { %850 = vmatprep.mubr.f32.mxu0 %v4134_v41 }
 0x4b8   : > { %v3470_v10 = vpop.trf.xlu0 }
 0x4b9   : > { %v622_v11 = vpop.trf.xlu1 }
 0x4ba   : > { %2498 = vmatmul.mubr.msk.f32.gmra.mrb[10].mxu0 %vm379_vm0, %v622_v11 }
 0x4bb   : > { %856 = vmatprep.mubr.f32.mxu0 %v4134_v41 }
 0x4bc   : > { %v3474_v12 = vpop.trf.xlu0 }
 0x4bd   : > { %v623_v13 = vpop.trf.xlu1 }
 0x4be   : > { %2499 = vmatmul.mubr.msk.f32.gmra.mrb[12].mxu0 %vm379_vm0, %v623_v13 }
 0x4bf   : > { %862 = vmatprep.mubr.f32.mxu0 %v4134_v41 }
 0x4c0   : > { %v3478_v14 = vpop.trf.xlu0 }
 0x4c1   : > { %v624_v15 = vpop.trf.xlu1 }
 0x4c2   : > { %2500 = vmatmul.mubr.msk.f32.gmra.mrb[14].mxu0 %vm379_vm0, %v624_v15 }
 0x4c3   : > { %868 = vmatprep.mubr.f32.mxu0 %v4134_v41 }
 0x4c4   : > { %v3482_v16 = vpop.trf.xlu0 }
 0x4c5   : > { %v625_v17 = vpop.trf.xlu1 }
 0x4c6   : > { %2501 = vmatmul.mubr.msk.f32.gmra.mrb[16].mxu0 %vm379_vm0, %v625_v17 }
 0x4c7   : > { %874 = vmatprep.mubr.f32.mxu0 %v4134_v41 }
 0x4c8   : > { %v659_v18 = vpop.trf.xlu0 }
 0x4c9   : > { %v626_v19 = vpop.trf.xlu1  ;;  %2519 = vmatmul.mubr.msk.f32.vlgmr.msra.gmra.mrb[2].mxu1 %vm379_vm0, %v659_v18 }
 0x4ca   : > { %2586 = vmatpush1.bf16.msra.mxu1 %v2581_v0  ;;  %2502 = vmatmul.mubr.msk.f32.gmra.mrb[18].mxu0 %vm379_vm0, %v626_v19 }
 0x4cb   : > { %880 = vmatprep.mubr.f32.mxu0 %v4134_v41  ;;  %982 = vmatprep.mubr.f32.mxu1 %v4134_v41 }
 0x4cc   : > { %v660_v20 = vpop.trf.xlu0 }
 0x4cd   : > { %v627_v21 = vpop.trf.xlu1  ;;  %2520 = vmatmul.mubr.msk.f32.gmra.mrb[4].mxu1 %vm379_vm0, %v660_v20 }
 0x4ce   : > { %2503 = vmatmul.mubr.msk.f32.gmra.mrb[20].mxu0 %vm379_vm0, %v627_v21  ;;  %988 = vmatprep.mubr.f32.mxu1 %v4134_v41 }
 0x4cf   : > { %886 = vmatprep.mubr.f32.mxu0 %v4134_v41 }
 0x4d0   : > { %v661_v22 = vpop.trf.xlu0 }
 0x4d1   : > { %v628_v23 = vpop.trf.xlu1  ;;  %2521 = vmatmul.mubr.msk.f32.gmra.mrb[6].mxu1 %vm379_vm0, %v661_v22 }
 0x4d2   : > { %2504 = vmatmul.mubr.msk.f32.gmra.mrb[22].mxu0 %vm379_vm0, %v628_v23  ;;  %994 = vmatprep.mubr.f32.mxu1 %v4134_v41 }
 0x4d3   : > { %892 = vmatprep.mubr.f32.mxu0 %v4134_v41 }
 0x4d4   : > { %v662_v24 = vpop.trf.xlu0 }
 0x4d5   : > { %v629_v25 = vpop.trf.xlu1  ;;  %2522 = vmatmul.mubr.msk.f32.gmra.mrb[8].mxu1 %vm379_vm0, %v662_v24 }
 0x4d6   : > { %2505 = vmatmul.mubr.msk.f32.gmra.mrb[24].mxu0 %vm379_vm0, %v629_v25  ;;  %1000 = vmatprep.mubr.f32.mxu1 %v4134_v41 }
 0x4d7   : > { %898 = vmatprep.mubr.f32.mxu0 %v4134_v41 }
 0x4d8   : > { %v663_v26 = vpop.trf.xlu0 }
 0x4d9   : > { %v630_v27 = vpop.trf.xlu1  ;;  %2523 = vmatmul.mubr.msk.f32.gmra.mrb[10].mxu1 %vm379_vm0, %v663_v26 }
 0x4da   : > { %2506 = vmatmul.mubr.msk.f32.gmra.mrb[26].mxu0 %vm379_vm0, %v630_v27  ;;  %1006 = vmatprep.mubr.f32.mxu1 %v4134_v41 }
 0x4db   : > { %904 = vmatprep.mubr.f32.mxu0 %v4134_v41 }
 0x4dc   : > { %v664_v28 = vpop.trf.xlu0 }
 0x4dd   : > { %v631_v29 = vpop.trf.xlu1  ;;  %2524 = vmatmul.mubr.msk.f32.gmra.mrb[12].mxu1 %vm379_vm0, %v664_v28 }
 0x4de   : > { %2507 = vmatmul.mubr.msk.f32.gmra.mrb[28].mxu0 %vm379_vm0, %v631_v29  ;;  %1012 = vmatprep.mubr.f32.mxu1 %v4134_v41 }
 0x4df   : > { %910 = vmatprep.mubr.f32.mxu0 %v4134_v41 }
 0x4e0   : > { %v665_v30 = vpop.trf.xlu0 }
 0x4e1   : > { %v632_v31 = vpop.trf.xlu1  ;;  %2525 = vmatmul.mubr.msk.f32.gmra.mrb[14].mxu1 %vm379_vm0, %v665_v30 }
 0x4e2   : > { %2508 = vmatmul.mubr.msk.f32.gmra.mrb[30].mxu0 %vm379_vm0, %v632_v31  ;;  %1163 = vmatprep.mubr.f32.mxu1 %v4134_v41 }
 0x4e3   : > { %916 = vmatprep.mubr.f32.mxu0 %v4134_v41 }
 0x4e4   : > { %v1035_v32 = vpop.trf.xlu0 }
 0x4e5   : > { %v633_v33 = vpop.trf.xlu1  ;;  %2526 = vmatmul.mubr.msk.f32.vlgmr.msra.gmra.mrb[16].mxu1 %vm379_vm0, %v1035_v32 }
 0x4e6   : > { %2509 = vmatmul.mubr.msk.f32.gmra.mrb[32].mxu0 %vm379_vm0, %v633_v33  ;;  %1169 = vmatprep.mubr.f32.mxu1 %v4134_v41 }
 0x4e7   : > { %922 = vmatprep.mubr.f32.mxu0 %v4134_v41 }
 0x4e8   : > { %v1036_v34 = vpop.trf.xlu0 }
 0x4e9   : > { %2527 = vmatmul.mubr.msk.f32.gmra.mrb[18].mxu1 %vm379_vm0, %v1036_v34 }
 0x4ea   : > { %2510 = vmatmul.mubr.msk.f32.gmra.mrb[34].mxu0 %vm379_vm0, %v3452_v1  ;;  %1175 = vmatprep.mubr.f32.mxu1 %v4134_v41 }
 0x4eb   : > { %928 = vmatprep.mubr.f32.mxu0 %v4134_v41 }
 0x4ec   : > { %v1037_v35 = vpop.trf.xlu0 }
 0x4ed   : > { %2528 = vmatmul.mubr.msk.f32.gmra.mrb[20].mxu1 %vm379_vm0, %v1037_v35 }
 0x4ee   : > { %2511 = vmatmul.mubr.msk.f32.gmra.mrb[36].mxu0 %vm379_vm0, %v3454_v2  ;;  %1181 = vmatprep.mubr.f32.mxu1 %v4134_v41 }
 0x4ef   : > { %934 = vmatprep.mubr.f32.mxu0 %v4134_v41 }
 0x4f0   : > { %v1038_v36 = vpop.trf.xlu0 }
 0x4f1   : > { %2529 = vmatmul.mubr.msk.f32.gmra.mrb[22].mxu1 %vm379_vm0, %v1038_v36 }
 0x4f2   : > { %2512 = vmatmul.mubr.msk.f32.gmra.mrb[38].mxu0 %vm379_vm0, %v3458_v4  ;;  %1187 = vmatprep.mubr.f32.mxu1 %v4134_v41 }
 0x4f3   : > { %940 = vmatprep.mubr.f32.mxu0 %v4134_v41 }
 0x4f4   : > { %v1039_v37 = vpop.trf.xlu0 }
 0x4f5   : > { %2530 = vmatmul.mubr.msk.f32.gmra.mrb[24].mxu1 %vm379_vm0, %v1039_v37 }
 0x4f6   : > { %2513 = vmatmul.mubr.msk.f32.gmra.mrb[40].mxu0 %vm379_vm0, %v3462_v6  ;;  %1193 = vmatprep.mubr.f32.mxu1 %v4134_v41 }
 0x4f7   : > { %946 = vmatprep.mubr.f32.mxu0 %v4134_v41 }
 0x4f8   : > { %v1040_v38 = vpop.trf.xlu0 }
 0x4f9   : > { %2531 = vmatmul.mubr.msk.f32.gmra.mrb[26].mxu1 %vm379_vm0, %v1040_v38 }
 0x4fa   : > { %2514 = vmatmul.mubr.msk.f32.gmra.mrb[42].mxu0 %vm379_vm0, %v3466_v8  ;;  %1199 = vmatprep.mubr.f32.mxu1 %v4134_v41 }
 0x4fb   : > { %952 = vmatprep.mubr.f32.mxu0 %v4134_v41 }
 0x4fc   : > { %v1041_v39 = vpop.trf.xlu0 }
 0x4fd   : > { %2532 = vmatmul.mubr.msk.f32.gmra.mrb[28].mxu1 %vm379_vm0, %v1041_v39 }
 0x4fe   : > { %2515 = vmatmul.mubr.msk.f32.gmra.mrb[44].mxu0 %vm379_vm0, %v3470_v10  ;;  %1205 = vmatprep.mubr.f32.mxu1 %v4134_v41 }
 0x4ff   : > { %958 = vmatprep.mubr.f32.mxu0 %v4134_v41 }
 0x500   : > { %v1042_v40 = vpop.trf.xlu0 }
 0x501   : > { %2533 = vmatmul.mubr.msk.f32.gmra.mrb[30].mxu1 %vm379_vm0, %v1042_v40 }
 0x502   : > { %2516 = vmatmul.mubr.msk.f32.gmra.mrb[46].mxu0 %vm379_vm0, %v3474_v12  ;;  %1211 = vmatprep.mubr.f32.mxu1 %v4134_v41 }
 0x503   : > { %964 = vmatprep.mubr.f32.mxu0 %v4134_v41 }
 0x504   : > { %v1043_v42 = vpop.trf.xlu0 }
 0x505   : > { %2534 = vmatmul.mubr.msk.f32.gmra.mrb[32].mxu1 %vm379_vm0, %v1043_v42 }
 0x506   : > { %2517 = vmatmul.mubr.msk.f32.gmra.mrb[48].mxu0 %vm379_vm0, %v3478_v14  ;;  %1217 = vmatprep.mubr.f32.mxu1 %v4134_v41 }
 0x507   : > { %970 = vmatprep.mubr.f32.mxu0 %v4134_v41 }
 0x508   : > { %v1044_v43 = vpop.trf.xlu0 }
 0x509   : > { %2535 = vmatmul.mubr.msk.f32.gmra.mrb[34].mxu1 %vm379_vm0, %v1044_v43 }
 0x50a   : > { %2518 = vmatmul.mubr.msk.f32.gmra.mrb[50].mxu0 %vm379_vm0, %v3482_v16  ;;  %1223 = vmatprep.mubr.f32.mxu1 %v4134_v41 }
 0x50b   : > { %2101 = vmatprep.mubr.f32.mxu0 %v4134_v41 }
 0x50c   : > { %v1045_v44 = vpop.trf.xlu0 }
 0x50d   : > { %2536 = vmatmul.mubr.msk.f32.gmra.mrb[36].mxu1 %vm379_vm0, %v1045_v44 }
 0x50e   : > { %1229 = vmatprep.mubr.f32.mxu1 %v4134_v41 }
 0x510   : > { %v1046_v45 = vpop.trf.xlu0 }
 0x511   : > { %2537 = vmatmul.mubr.msk.f32.gmra.mrb[38].mxu1 %vm379_vm0, %v1046_v45 }
 0x512   : > { %1235 = vmatprep.mubr.f32.mxu1 %v4134_v41 }
 0x514   : > { %v1047_v46 = vpop.trf.xlu0 }
 0x515   : > { %2538 = vmatmul.mubr.msk.f32.gmra.mrb[40].mxu1 %vm379_vm0, %v1047_v46 }
 0x516   : > { %1241 = vmatprep.mubr.f32.mxu1 %v4134_v41 }
 0x518   : > { %v1048_v47 = vpop.trf.xlu0 }
 0x519   : > { %2539 = vmatmul.mubr.msk.f32.gmra.mrb[42].mxu1 %vm379_vm0, %v1048_v47 }
 0x51a   : > { %1247 = vmatprep.mubr.f32.mxu1 %v4134_v41 }
 0x51c   : > { %v1049_v48 = vpop.trf.xlu0 }
 0x51d   : > { %2540 = vmatmul.mubr.msk.f32.gmra.mrb[44].mxu1 %vm379_vm0, %v1049_v48 }
 0x51e   : > { %1253 = vmatprep.mubr.f32.mxu1 %v4134_v41 }
 0x520   : > { %v1050_v49 = vpop.trf.xlu0 }
 0x521   : > { %2541 = vmatmul.mubr.msk.f32.gmra.mrb[46].mxu1 %vm379_vm0, %v1050_v49 }
 0x57d   : > { %v828_v50 = vpop.f32.mrb[2].mxu0 }
 0x57e   : > { %v830_v51 = vpop.f32.mrb[3].mxu0 }
 0x581   : > { %v834_v52 = vpop.f32.mrb[4].mxu0 }
 0x582   : > { %v836_v53 = vpop.f32.mrb[5].mxu0 }
 0x585   : > { %v840_v54 = vpop.f32.mrb[6].mxu0 }
 0x586   : > { %v1484_v55 = vmax.f32 %v828_v50, %v840_v54  ;;  %v842_v56 = vpop.f32.mrb[7].mxu0 }
 0x587   : > { %v1493_v57 = vmax.f32 %v830_v51, %v842_v56 }
 0x589   : > { %v846_v58 = vpop.f32.mrb[8].mxu0 }
 0x58a   : > { %v1485_v59 = vmax.f32 %v834_v52, %v846_v58  ;;  %v3574_v60 = vpop.f32.mrb[9].mxu0 }
 0x58b   : > { %v1494_v61 = vmax.f32 %v836_v53, %v3574_v60 }
 0x58c   : > { %v1486_v62 = vmax.f32 %v1484_v55, %v1485_v59 }
 0x58d   : > { %v1495_v63 = vmax.f32 %v1493_v57, %v1494_v61  ;;  %v3577_v0 = vpop.f32.mrb[10].mxu0 }
 0x58e   : > { %v1487_v1 = vrot.slane %v1486_v62, 4  ;;  %v3579_v2 = vpop.f32.mrb[11].mxu0 }
 0x58f   : > { %v1496_v3 = vrot.slane %v1495_v63, 4 }
 0x590   : > { %v1488_v4 = vmax.f32 %v1486_v62, %v1487_v1 }
 0x591   : > { %v1497_v5 = vmax.f32 %v1495_v63, %v1496_v3  ;;  %v3581_v6 = vpop.f32.mrb[12].mxu0 }
 0x592   : > { %v1489_v7 = vrot.slane %v1488_v4, 2  ;;  %v3583_v8 = vpop.f32.mrb[13].mxu0 }
 0x593   : > { %v1498_v9 = vrot.slane %v1497_v5, 2 }
 0x594   : > { %v1490_v10 = vmax.f32 %v1488_v4, %v1489_v7 }
 0x595   : > { %v1499_v11 = vmax.f32 %v1497_v5, %v1498_v9  ;;  %v3585_v12 = vpop.f32.mrb[14].mxu0 }
 0x596   : > { %v1491_v13 = vrot.slane %v1490_v10, 1  ;;  %v1562_v14 = vmax.f32 %v3577_v0, %v3585_v12  ;;  %v3589_v15 = vpop.f32.mrb[15].mxu0 }
 0x597   : > { %v1500_v16 = vrot.slane %v1499_v11, 1  ;;  %v1571_v17 = vmax.f32 %v3579_v2, %v3589_v15 }
 0x598   : > { %v1492_v18 = vmax.f32 %v1490_v10, %v1491_v13 }
 0x599   : > { %v1501_v19 = vmax.f32 %v1499_v11, %v1500_v16  ;;  %v3593_v20 = vpop.f32.mrb[16].mxu0 }
 0x59a   : > { %v1502_v21 = vsub.f32 %v828_v50, %v1492_v18  ;;  %v1504_v22 = vsub.f32 %v834_v52, %v1492_v18  ;;  %v1506_v23 = vsub.f32 %v840_v54, %v1492_v18  ;;  %v1508_v24 = vsub.f32 %v846_v58, %v1492_v18  ;;  %v3595_v25 = vpop.f32.mrb[17].mxu0 }
 0x59b   : > { %v1503_v26 = vsub.f32 %v830_v51, %v1501_v19  ;;  %v1505_v27 = vsub.f32 %v836_v53, %v1501_v19  ;;  %v1507_v28 = vsub.f32 %v842_v56, %v1501_v19  ;;  %v1509_v29 = vsub.f32 %v3574_v60, %v1501_v19 }
 0x59c   : > { %v1510_v30 = vmul.f32 1.442695, %v1502_v21  ;;  %v1514_v31 = vmul.f32 1.442695, %v1504_v22  ;;  %v1518_v32 = vmul.f32 1.442695, %v1506_v23  ;;  %v1563_v33 = vmax.f32 %v3581_v6, %v3593_v20 }
 0x59d   : > { %v1522_v34 = vmul.f32 1.442695, %v1508_v24  ;;  %v1572_v35 = vmax.f32 %v3583_v8, %v3595_v25  ;;  %v1512_v36 = vmul.f32 1.442695, %v1503_v26  ;;  %v3602_v38 = vpop.f32.mrb[18].mxu0  ;;  %v3604_v39 = vpop.f32.mrb[2].mxu1 }
 0x59e   : > { %2793 = vpow2.f32 %v1510_v30  ;;  %v1564_v37 = vmax.f32 %v1562_v14, %v1563_v33  ;;  %v1516_v40 = vmul.f32 1.442695, %v1505_v27  ;;  %v3606_v43 = vpop.f32.mrb[19].mxu0  ;;  %v3608_v44 = vpop.f32.mrb[3].mxu1  ;;  %v1520_v48 = vmul.f32 1.442695, %v1507_v28 }
 0x59f   : > { %2795 = vpow2.f32 %v1514_v31  ;;  %v1573_v42 = vmax.f32 %v1571_v17, %v1572_v35  ;;  %v1524_v55 = vmul.f32 1.442695, %v1509_v29 }
 0x5a0   : > { %2797 = vpow2.f32 %v1518_v32  ;;  %v1565_v45 = vrot.slane %v1564_v37, 4  ;;  %v3610_v46 = vpop.f32.mrb[4].mxu1 }
 0x5a1   : > { %2799 = vpow2.f32 %v1522_v34  ;;  %v1574_v49 = vrot.slane %v1573_v42, 4  ;;  %v3614_v50 = vpop.f32.mrb[20].mxu0  ;;  %v3616_v51 = vpop.f32.mrb[5].mxu1 }
 0x5a2   : > { %2801 = vpow2.f32 %v1512_v36  ;;  %v1566_v52 = vmax.f32 %v1564_v37, %v1565_v45  ;;  %v3618_v53 = vpop.f32.mrb[21].mxu0 }
 0x5a3   : > { %2803 = vpow2.f32 %v1516_v40  ;;  %v1575_v56 = vmax.f32 %v1573_v42, %v1574_v49 }
 0x5a4   : > { %v1567_v57 = vrot.slane %v1566_v52, 2  ;;  %v3622_v58 = vpop.f32.mrb[6].mxu1  ;;  %2805 = vpow2.f32 %v1520_v48 }
 0x5a5   : > { %v1576_v59 = vrot.slane %v1575_v56, 2  ;;  %v3624_v60 = vpop.f32.mrb[22].mxu0  ;;  %v3626_v61 = vpop.f32.mrb[7].mxu1  ;;  %2807 = vpow2.f32 %v1524_v55 }
 0x5a6   : > { %v1568_v62 = vmax.f32 %v1566_v52, %v1567_v57  ;;  %v1640_v63 = vmax.f32 %v3602_v38, %v3624_v60  ;;  %v3630_v1 = vpop.f32.mrb[23].mxu0 }
 0x5a7   : > { %v1577_v4 = vmax.f32 %v1575_v56, %v1576_v59  ;;  %v1649_v5 = vmax.f32 %v3606_v43, %v3630_v1 }
 0x5a8   : > { %v3636_v7 = vpop.eup %2793  ;;  %v1569_v9 = vrot.slane %v1568_v62, 1  ;;  %v3638_v10 = vpop.f32.mrb[8].mxu1 }
 0x5a9   : > { %v3640_v11 = vpop.eup %2795  ;;  %v1578_v13 = vrot.slane %v1577_v4, 1  ;;  %v3642_v14 = vpop.f32.mrb[24].mxu0 }
 0x5aa   : > { %v3644_v16 = vpop.f32.mrb[9].mxu1  ;;  %v3646_v17 = vpop.eup %2797  ;;  %v1526_v18 = vadd.f32 %v3640_v11, %v3636_v7  ;;  %v1570_v19 = vmax.f32 %v1568_v62, %v1569_v9  ;;  %v1641_v21 = vmax.f32 %v3614_v50, %v3642_v14 }
 0x5ab   : > { %4177 = vst [vmem:[#allocation17_spill] sm:$0xff] %v3644_v16  ;;  %v3652_v22 = vpop.f32.mrb[25].mxu0  ;;  %v3656_v24 = vpop.eup %2799  ;;  %v1579_v26 = vmax.f32 %v1577_v4, %v1578_v13 }
 0x5ac   : > { %v1650_v27 = vmax.f32 %v3618_v53, %v3652_v22  ;;  %v3660_v28 = vpop.eup %2801  ;;  %v1527_v29 = vadd.f32 %v3646_v17, %v1526_v18  ;;  %v1580_v30 = vsub.f32 %v3577_v0, %v1570_v19  ;;  %v1582_v31 = vsub.f32 %v3581_v6, %v1570_v19  ;;  %v3666_v33 = vpop.f32.mrb[10].mxu1 }
 0x5ad   : > { %v1584_v32 = vsub.f32 %v3585_v12, %v1570_v19  ;;  %4178 = vst [vmem:[#allocation18_spill] sm:$0xff] %v3666_v33  ;;  %v3668_v34 = vpop.eup %2803  ;;  %v1586_v35 = vsub.f32 %v3593_v20, %v1570_v19  ;;  %v1581_v36 = vsub.f32 %v3579_v2, %v1579_v26  ;;  %v1583_v37 = vsub.f32 %v3583_v8, %v1579_v26  ;;  %v3674_v42 = vpop.f32.mrb[26].mxu0 }
 0x5ae   : > { %v1585_v40 = vsub.f32 %v3589_v15, %v1579_v26  ;;  %v3676_v45 = vpop.f32.mrb[11].mxu1  ;;  %v1528_v0 = vadd.f32 %v3656_v24, %v1527_v29  ;;  %v1535_v6 = vadd.f32 %v3668_v34, %v3660_v28  ;;  %v1588_v12 = vmul.f32 1.442695, %v1580_v30  ;;  %v3681_v49 = vpop.f32.mrb[27].mxu0 }
 0x5af   : > { %4179 = vst [vmem:[#allocation19_spill] sm:$0xff] %v3676_v45  ;;  %v1592_v48 = vmul.f32 1.442695, %v1582_v31  ;;  %v3683_v20 = vpop.eup %2805  ;;  %v1596_v2 = vmul.f32 1.442695, %v1584_v32  ;;  %v1587_v8 = vsub.f32 %v3595_v25, %v1579_v26  ;;  %v1642_v9 = vmax.f32 %v1640_v63, %v1641_v21 }
 0x5b0   : > { %v1600_v52 = vmul.f32 1.442695, %v1586_v35  ;;  %v1529_v15 = vrot.slane %v1528_v0, 4  ;;  %v1536_v55 = vadd.f32 %v3683_v20, %v1535_v6  ;;  %2809 = vpow2.f32 %v1588_v12  ;;  %v3687_v57 = vpop.f32.mrb[12].mxu1  ;;  %v3689_v59 = vpop.eup %2807 }
 0x5b1   : > { %v1590_v56 = vmul.f32 1.442695, %v1581_v36  ;;  %4180 = vst [vmem:[#allocation20_spill] sm:$0xff] %v3687_v57  ;;  %2811 = vpow2.f32 %v1592_v48  ;;  %v1594_v62 = vmul.f32 1.442695, %v1583_v37  ;;  %v3691_v13 = vpop.f32.mrb[28].mxu0  ;;  %v1651_v26 = vmax.f32 %v1649_v5, %v1650_v27 }
 0x5b2   : > { %v1598_v4 = vmul.f32 1.442695, %v1585_v40  ;;  %v3693_v18 = vpop.f32.mrb[13].mxu1  ;;  %v1530_v19 = vadd.f32 %v1529_v15, %v1528_v0  ;;  %v1537_v25 = vadd.f32 %v3689_v59, %v1536_v55  ;;  %2813 = vpow2.f32 %v1596_v2  ;;  %v3696_v29 = vpop.f32.mrb[29].mxu0 }
 0x5b3   : > { %4181 = vst [vmem:[#allocation21_spill] sm:$0xff] %v3693_v18  ;;  %2815 = vpow2.f32 %v1600_v52  ;;  %v1643_v30 = vrot.slane %v1642_v9, 4  ;;  %v1652_v35 = vrot.slane %v1651_v26, 4  ;;  %v1602_v37 = vmul.f32 1.442695, %v1587_v8 }
 0x5b4   : > { %v1531_v63 = vrot.slane %v1530_v19, 2  ;;  %v1538_v21 = vrot.slane %v1537_v25, 4  ;;  %2817 = vpow2.f32 %v1590_v56  ;;  %v3702_v36 = vpop.f32.mrb[14].mxu1 }
 0x5b5   : > { %4182 = vst [vmem:[#allocation22_spill] sm:$0xff] %v3702_v36  ;;  %2819 = vpow2.f32 %v1594_v62  ;;  %v1644_v40 = vmax.f32 %v1642_v9, %v1643_v30  ;;  %v3704_v5 = vpop.f32.mrb[30].mxu0  ;;  %v3706_v27 = vpop.f32.mrb[15].mxu1  ;;  %v1653_v12 = vmax.f32 %v1651_v26, %v1652_v35 }
 0x5b6   : > { %4183 = vst [vmem:[#allocation23_spill] sm:$0xff] %v3706_v27  ;;  %v1532_v0 = vadd.f32 %v1531_v63, %v1530_v19  ;;  %v1539_v6 = vadd.f32 %v1538_v21, %v1537_v25  ;;  %v3708_v48 = vpop.f32.mrb[31].mxu0  ;;  %2821 = vpow2.f32 %v1598_v4  ;;  %v1718_v52 = vmax.f32 %v3674_v42, %v3704_v5 }
 0x5b7   : > { %v1645_v2 = vrot.slane %v1644_v40, 2  ;;  %v1727_v15 = vmax.f32 %v3681_v49, %v3708_v48  ;;  %v1654_v56 = vrot.slane %v1653_v12, 2  ;;  %2823 = vpow2.f32 %v1602_v37 }
 0x5b8   : > { %v1533_v55 = vrot.slane %v1532_v0, 1  ;;  %v1540_v8 = vrot.slane %v1539_v6, 2  ;;  %v1165_v9 = vpop.f32.mrb[16].mxu1 }
 0x5b9   : > { %v1646_v19 = vmax.f32 %v1644_v40, %v1645_v2  ;;  %v3716_v25 = vpop.f32.mrb[32].mxu0  ;;  %v1167_v26 = vpop.f32.mrb[17].mxu1  ;;  %v1655_v21 = vmax.f32 %v1653_v12, %v1654_v56 }
 0x5ba   : > { %v3718_v4 = vpop.eup %2809  ;;  %v1534_v30 = vadd.f32 %v1533_v55, %v1532_v0  ;;  %v1541_v63 = vadd.f32 %v1540_v8, %v1539_v6  ;;  %v1719_v35 = vmax.f32 %v3691_v13, %v3716_v25  ;;  %v3722_v41 = vpop.f32.mrb[33].mxu0 }
 0x5bb   : > { %v3724_v32 = vpop.eup %2811  ;;  %v1647_v31 = vrot.slane %v1646_v19, 1  ;;  %v1728_v37 = vmax.f32 %v3696_v29, %v3722_v41  ;;  %v1656_v6 = vrot.slane %v1655_v21, 1 }
 0x5bc   : > { %v3728_v40 = vpop.eup %2813  ;;  %2825 = vrcp.f32 %v1534_v30  ;;  %v1542_v2 = vrot.slane %v1541_v63, 1  ;;  %v1604_v0 = vadd.f32 %v3724_v32, %v3718_v4  ;;  %v1171_v12 = vpop.f32.mrb[18].mxu1  ;;  %v1720_v56 = vmax.f32 %v1718_v52, %v1719_v35 }
 0x5bd   : > { %v3732_v55 = vpop.eup %2815  ;;  %v1648_v8 = vmax.f32 %v1646_v19, %v1647_v31  ;;  %v1729_v62 = vmax.f32 %v1727_v15, %v1728_v37  ;;  %v3734_v23 = vpop.f32.mrb[34].mxu0  ;;  %v2589_v3 = vpack.c.bf16 %v1171_v12, %v1165_v9  ;;  %v1657_v36 = vmax.f32 %v1655_v21, %v1656_v6 }
 0x5be   : > { %4184 = vst [vmem:[#allocation24_spill] sm:$0xff] %v3734_v23  ;;  %v1173_v54 = vpop.f32.mrb[19].mxu1  ;;  %v3736_v47 = vpop.eup %2817  ;;  %v1543_v27 = vadd.f32 %v1542_v2, %v1541_v63  ;;  %v1605_v30 = vadd.f32 %v3728_v40, %v1604_v0 }
 0x5bf   : > { %v3739_v18 = vpop.f32.mrb[35].mxu0  ;;  %v2587_v57 = vpack.c.bf16 %v1173_v54, %v1167_v26  ;;  %v3741_v45 = vpop.eup %2819  ;;  %v1658_v33 = vsub.f32 %v3602_v38, %v1648_v8  ;;  %v1660_v31 = vsub.f32 %v3614_v50, %v1648_v8  ;;  %v1662_v52 = vsub.f32 %v3624_v60, %v1648_v8 }
 0x5c0   : > { %4185 = vst [vmem:[#allocation25_spill] sm:$0xff] %v3739_v18  ;;  %v1664_v15 = vsub.f32 %v3642_v14, %v1648_v8  ;;  %2827 = vrcp.f32 %v1543_v27  ;;  %v1606_v9 = vadd.f32 %v3732_v55, %v1605_v30  ;;  %v1613_v19 = vadd.f32 %v3741_v45, %v3736_v47  ;;  %v3751_v54 = vpop.f32.mrb[20].mxu1  ;;  %v3753_v26 = vpop.eup %2821 }
 0x5c1   : > { %v1659_v63 = vsub.f32 %v3606_v43, %v1657_v36  ;;  %2588 = vmatprep.subr.bf16.mxu1 %v2587_v57  ;;  %v1666_v38 = vmul.f32 1.442695, %v1658_v33  ;;  %v1670_v21 = vmul.f32 1.442695, %v1660_v31  ;;  %v1674_v50 = vmul.f32 1.442695, %v1662_v52  ;;  %v3762_v57 = vpop.eup %2823 }
 0x5c2   : > { %v1661_v60 = vsub.f32 %v3618_v53, %v1657_v36  ;;  %2590 = vmatpush1.bf16.xpose.msra.mxu1 %v2589_v3  ;;  %v1607_v14 = vrot.slane %v1606_v9, 4  ;;  %v1614_v27 = vadd.f32 %v3753_v26, %v1613_v19  ;;  %v1678_v35 = vmul.f32 1.442695, %v1664_v15  ;;  %v3758_v2 = vpop.f32.mrb[36].mxu0  ;;  %v3760_v43 = vpop.f32.mrb[21].mxu1 }
 0x5c3   : > { %v1663_v37 = vsub.f32 %v3630_v1, %v1657_v36  ;;  %4186 = vst [vmem:[#allocation26_spill] sm:$0xff] %v3758_v2  ;;  %2829 = vpow2.f32 %v1666_v38  ;;  %v1665_v33 = vsub.f32 %v3652_v22, %v1657_v36  ;;  %v1668_v0 = vmul.f32 1.442695, %v1659_v63  ;;  %v3765_v12 = vpop.f32.mrb[37].mxu0 }
 0x5c4   : > { %v1672_v6 = vmul.f32 1.442695, %v1661_v60  ;;  %4187 = vst [vmem:[#allocation27_spill] sm:$0xff] %v3765_v12  ;;  %v1608_v53 = vadd.f32 %v1607_v14, %v1606_v9  ;;  %v1615_v3 = vadd.f32 %v3762_v57, %v1614_v27  ;;  %2831 = vpow2.f32 %v1670_v21  ;;  %v3768_v30 = vpop.f32.mrb[22].mxu1 }
 0x5c5   : > { %v1676_v8 = vmul.f32 1.442695, %v1663_v37  ;;  %2833 = vpow2.f32 %v1674_v50  ;;  %v1680_v1 = vmul.f32 1.442695, %v1665_v33  ;;  %v1721_v31 = vrot.slane %v1720_v56, 4  ;;  %v3770_v15 = vpop.f32.mrb[38].mxu0 }
 0x5c6   : > { %v1730_v52 = vrot.slane %v1729_v62, 4  ;;  %4188 = vst [vmem:[#allocation28_spill] sm:$0xff] %v3770_v15  ;;  %v3772_v19 = vpop.f32.mrb[23].mxu1  ;;  %v2826_v22 = vpop.eup %2825  ;;  %v1609_v36 = vrot.slane %v1608_v53, 2  ;;  %v1616_v63 = vrot.slane %v1615_v3, 4  ;;  %2835 = vpow2.f32 %v1678_v35 }
 0x5c7   : > { %v1260_v9 = vmax.f32 %v3734_v23, %v3739_v18  ;;  %v3776_v38 = vpop.f32.mrb[39].mxu0  ;;  %2837 = vpow2.f32 %v1668_v0  ;;  %v1722_v21 = vmax.f32 %v1720_v56, %v1721_v31  ;;  %v1263_v50 = vmax.f32 %v3758_v2, %v3765_v12 }
 0x5c8   : > { %4189 = vst [vmem:[#allocation29_spill] sm:$0xff] %v3776_v38  ;;  %v1731_v60 = vmax.f32 %v1729_v62, %v1730_v52  ;;  %v1610_v14 = vadd.f32 %v1609_v36, %v1608_v53  ;;  %v1617_v27 = vadd.f32 %v1616_v63, %v1615_v3  ;;  %2839 = vpow2.f32 %v1672_v6  ;;  %v3782_v33 = vpop.f32.mrb[24].mxu1 }
 0x5c9   : > { %1261 = vmax.xlane.f32.xlu1 %v1260_v9  ;;  %v1266_v37 = vmax.f32 %v3770_v15, %v3776_v38  ;;  %2841 = vpow2.f32 %v1676_v8  ;;  %v1723_v35 = vrot.slane %v1722_v21, 2  ;;  %1264 = vmax.xlane.f32.xlu0 %v1263_v50  ;;  %v3784_v23 = vpop.f32.mrb[40].mxu0  ;;  %v1546_v62 = vmul.f32 %v2826_v22, %v3636_v7  ;;  %v3787_v56 = vpop.f32.mrb[25].mxu1 }
 0x5ca   : > { %v1732_v18 = vrot.slane %v1731_v60, 2  ;;  %v2828_v0 = vpop.eup %2827  ;;  %v1611_v53 = vrot.slane %v1610_v14, 1  ;;  %v1618_v3 = vrot.slane %v1617_v27, 2  ;;  %2843 = vpow2.f32 %v1680_v1  ;;  %v3789_v6 = vpop.f32.mrb[41].mxu0 }
 0x5cb   : > { %v1548_v31 = vmul.f32 %v2826_v22, %v3640_v11  ;;  %v1724_v52 = vmax.f32 %v1722_v21, %v1723_v35  ;;  %v1547_v8 = vmul.f32 %v2828_v0, %v3660_v28  ;;  %v1549_v63 = vmul.f32 %v2828_v0, %v3668_v34 }
 0x5cc   : > { %v1733_v36 = vmax.f32 %v1731_v60, %v1732_v18  ;;  %v1612_v9 = vadd.f32 %v1611_v53, %v1610_v14  ;;  %v1619_v50 = vadd.f32 %v1618_v3, %v1617_v27  ;;  %v1551_v38 = vmul.f32 %v2828_v0, %v3683_v20  ;;  %v3795_v15 = vpop.f32.mrb[26].mxu1 }
 0x5cd   : > { %1267 = vmax.xlane.f32.xlu1 %v1266_v37  ;;  %v2621_v7 = vpack.c.bf16 %v1548_v31, %v1546_v62  ;;  %v3797_v12 = vpop.eup %2829  ;;  %v1725_v1 = vrot.slane %v1724_v52, 1  ;;  %v2619_v16 = vpack.c.bf16 %v1549_v63, %v1547_v8  ;;  %v1553_v11 = vmul.f32 %v2828_v0, %v3689_v59  ;;  %v3800_v18 = vpop.f32.mrb[42].mxu0 }
 0x5ce   : > { %v1734_v2 = vrot.slane %v1733_v36, 1  ;;  %v3802_v28 = vpop.f32.mrb[27].mxu1  ;;  %v3804_v34 = vpop.eup %2831  ;;  %2845 = vrcp.f32 %v1612_v9  ;;  %v1620_v21 = vrot.slane %v1619_v50, 1  ;;  %v1269_v20 = vmax.f32 %v3784_v23, %v3789_v6 }
 0x5cf   : > { %v3808_v60 = vpop.f32.mrb[43].mxu0  ;;  %v3811_v14 = vmul.f32 %v2826_v22, %v3646_v17  ;;  %v3813_v27 = vpop.eup %2833  ;;  %v1682_v59 = vadd.f32 %v3804_v34, %v3797_v12  ;;  %v1726_v37 = vmax.f32 %v1724_v52, %v1725_v1  ;;  %2620 = vmatprep.subr.bf16.mxu0 %v2619_v16  ;;  %v2623_v62 = vpack.c.bf16 %v1553_v11, %v1551_v38 }
 0x5d0   : > { %4190 = vst [vmem:[#allocation30_spill] sm:$0xff] %v3808_v60  ;;  %v1735_v35 = vmax.f32 %v1733_v36, %v1734_v2  ;;  %v3817_v0 = vpop.eup %2835  ;;  %v1621_v53 = vadd.f32 %v1620_v21, %v1619_v50  ;;  %2622 = vmatpush1.bf16.msra.mxu0 %v2621_v7  ;;  %v1552_v3 = vmul.f32 %v2826_v22, %v3656_v24  ;;  %v3822_v31 = vpop.f32.mrb[28].mxu1 }
 0x5d1   : > { %1270 = vmax.xlane.f32.xlu1 %v1269_v20  ;;  %v1272_v17 = vmax.f32 %v3800_v18, %v3808_v60  ;;  %v3824_v8 = vpop.eup %2837  ;;  %v1683_v63 = vadd.f32 %v3813_v27, %v1682_v59  ;;  %v1736_v2 = vsub.f32 %v3674_v42, %v1726_v37  ;;  %v1738_v16 = vsub.f32 %v3691_v13, %v1726_v37  ;;  %v3830_v52 = vpop.f32.mrb[44].mxu0 }
 0x5d2   : > { %v1740_v38 = vsub.f32 %v3704_v5, %v1726_v37  ;;  %2624 = vmatprep.subr.bf16.mxu0 %v2623_v62  ;;  %v3832_v36 = vpop.f32.mrb[29].mxu1  ;;  %v3834_v24 = vpop.eup %2839  ;;  %2847 = vrcp.f32 %v1621_v53  ;;  %v1742_v22 = vsub.f32 %v3716_v25, %v1726_v37  ;;  %v1737_v9 = vsub.f32 %v3681_v49, %v1735_v35 }
 0x5d3   : > { %v1739_v50 = vsub.f32 %v3696_v29, %v1735_v35  ;;  %v3839_v7 = vpop.f32.mrb[45].mxu0  ;;  %v3841_v42 = vpop.eup %2841  ;;  %v1684_v13 = vadd.f32 %v3817_v0, %v1683_v63  ;;  %v1691_v5 = vadd.f32 %v3834_v24, %v3824_v8  ;;  %v1744_v1 = vmul.f32 1.442695, %v1736_v2 }
 0x5d4   : > { %v1748_v11 = vmul.f32 1.442695, %v1738_v16  ;;  %v3846_v21 = vpop.eup %2843  ;;  %v1752_v20 = vmul.f32 1.442695, %v1740_v38  ;;  %v1756_v59 = vmul.f32 1.442695, %v1742_v22  ;;  %v1741_v25 = vsub.f32 %v3708_v48, %v1735_v35 }
 0x5d5   : > { %v1743_v49 = vsub.f32 %v3722_v41, %v1735_v35  ;;  %1273 = vmax.xlane.f32.xlu1 %v1272_v17  ;;  %v3850_v29 = vpop.f32.mrb[30].mxu1  ;;  %v1685_v37 = vrot.slane %v1684_v13, 4  ;;  %v1692_v62 = vadd.f32 %v3841_v42, %v1691_v5  ;;  %2849 = vpow2.f32 %v1744_v1  ;;  %v3853_v63 = vpop.f32.mrb[46].mxu0 }
 0x5d6   : > { %v1746_v53 = vmul.f32 1.442695, %v1737_v9  ;;  %v3855_v2 = vpop.f32.mrb[31].mxu1  ;;  %2851 = vpow2.f32 %v1748_v11  ;;  %v1750_v16 = vmul.f32 1.442695, %v1739_v50  ;;  %v2625_v41 = vpack.c.bf16 %v1552_v3, %v3811_v14  ;;  %v3859_v35 = vpop.f32.mrb[47].mxu0 }
 0x5d7   : > { %v1754_v38 = vmul.f32 1.442695, %v1741_v25  ;;  %v1758_v22 = vmul.f32 1.442695, %v1743_v49  ;;  %v1686_v60 = vadd.f32 %v1685_v37, %v1684_v13  ;;  %v1693_v48 = vadd.f32 %v3846_v21, %v1692_v62  ;;  %4191 = vst [vmem:[#allocation31_spill] sm:$0xff] %v3859_v35 }
 0x5d8   : > { %2853 = vpow2.f32 %v1752_v20  ;;  %v2846_v17 = vpop.eup %2845  ;;  %v1275_v9 = vmax.f32 %v3830_v52, %v3839_v7  ;;  %v1278_v5 = vmax.f32 %v3853_v63, %v3859_v35  ;;  %v2593_v50 = vpack.c.bf16 %v3768_v30, %v3751_v54  ;;  %v3867_v1 = vpop.f32.mrb[32].mxu1  ;;  %2626 = vmatpush1.bf16.msra.mxu0 %v2625_v41 }
 0x5d9   : > { %2855 = vpow2.f32 %v1756_v59  ;;  %v1687_v13 = vrot.slane %v1686_v60, 2  ;;  %v1694_v11 = vrot.slane %v1693_v48, 4  ;;  %v3869_v14 = vpop.f32.mrb[48].mxu0  ;;  %v1624_v3 = vmul.f32 %v2846_v17, %v3718_v4  ;;  %v3872_v20 = vpop.f32.mrb[33].mxu1 }
 0x5da   : > { %2857 = vpow2.f32 %v1746_v53  ;;  %1276 = vmax.xlane.f32.xlu1 %v1275_v9  ;;  %v3874_v59 = vpop.f32.mrb[49].mxu0  ;;  %v1626_v25 = vmul.f32 %v2846_v17, %v3724_v32  ;;  %v1628_v54 = vmul.f32 %v2846_v17, %v3728_v40  ;;  %v1630_v30 = vmul.f32 %v2846_v17, %v3732_v55 }
 0x5db   : > { %2859 = vpow2.f32 %v1750_v16  ;;  %v1688_v49 = vadd.f32 %v1687_v13, %v1686_v60  ;;  %v1695_v37 = vadd.f32 %v1694_v11, %v1693_v48  ;;  %v1281_v62 = vmax.f32 %v3869_v14, %v3874_v59 }
 0x5dc   : > { %v2848_v53 = vpop.eup %2847  ;;  %2861 = vpow2.f32 %v1754_v38  ;;  %v2629_v4 = vpack.c.bf16 %v1626_v25, %v1624_v3  ;;  %v2633_v41 = vpack.c.bf16 %v1630_v30, %v1628_v54  ;;  %v2591_v16 = vpack.c.bf16 %v3772_v19, %v3760_v43  ;;  %v3883_v9 = vpop.f32.mrb[34].mxu1 }
 0x5dd   : > { %v1689_v35 = vrot.slane %v1688_v49, 1  ;;  %v1696_v32 = vrot.slane %v1695_v37, 2  ;;  %v1625_v40 = vmul.f32 %v2848_v53, %v3736_v47  ;;  %v1627_v55 = vmul.f32 %v2848_v53, %v3741_v45  ;;  %v3887_v60 = vpop.f32.mrb[50].mxu0  ;;  %v3889_v48 = vpop.f32.mrb[35].mxu1 }
 0x5de   : > { %2863 = vpow2.f32 %v1758_v22  ;;  %1279 = vmax.xlane.f32.xlu1 %v1278_v5  ;;  %v1629_v38 = vmul.f32 %v2848_v53, %v3753_v26  ;;  %v1631_v17 = vmul.f32 %v2848_v53, %v3762_v57  ;;  %v3893_v13 = vpop.f32.mrb[51].mxu0  ;;  %2592 = vmatprep.subr.bf16.mxu1 %v2591_v16  ;;  %v2597_v43 = vpack.c.bf16 %v3795_v15, %v3782_v33 }
 0x5df   : > { %v3897_v19 = vpop.eup %2849  ;;  %v1690_v47 = vadd.f32 %v1689_v35, %v1688_v49  ;;  %v1697_v45 = vadd.f32 %v1696_v32, %v1695_v37  ;;  %v2627_v11 = vpack.c.bf16 %v1627_v55, %v1625_v40  ;;  %v1284_v3 = vmax.f32 %v3887_v60, %v3893_v13  ;;  %2594 = vmatpush1.bf16.xpose.msra.mxu1 %v2593_v50 }
 0x5e0   : > { %v3901_v22 = vpop.eup %2851  ;;  %v2631_v26 = vpack.c.bf16 %v1631_v17, %v1629_v38  ;;  %v2595_v57 = vpack.c.bf16 %v3802_v28, %v3787_v56  ;;  %v2601_v5 = vpack.c.bf16 %v3850_v29, %v3822_v31  ;;  %v2599_v15 = vpack.c.bf16 %v3855_v2, %v3832_v36  ;;  %v3909_v33 = vpop.f32.mrb[36].mxu1 }
 0x5e1   : > { %2865 = vrcp.f32 %v1690_v47  ;;  %v1698_v25 = vrot.slane %v1697_v45, 1  ;;  %v1760_v50 = vadd.f32 %v3901_v22, %v3897_v19  ;;  %2628 = vmatprep.subr.bf16.mxu0 %v2627_v11  ;;  %v2605_v54 = vpack.c.bf16 %v3883_v9, %v3867_v1  ;;  %v3917_v56 = vpop.f32.mrb[37].mxu1 }
 0x5e2   : > { %v3911_v35 = vpop.eup %2853  ;;  %2630 = vmatpush1.bf16.msra.mxu0 %v2629_v4  ;;  %1282 = vmax.xlane.f32.xlu1 %v1281_v62  ;;  %v2603_v31 = vpack.c.bf16 %v3889_v48, %v3872_v20 }
 0x5e3   : > { %v3919_v28 = vpop.eup %2855  ;;  %v1699_v29 = vadd.f32 %v1698_v25, %v1697_v45  ;;  %v1761_v2 = vadd.f32 %v3911_v35, %v1760_v50  ;;  %2632 = vmatprep.subr.bf16.mxu0 %v2631_v26  ;;  %2596 = vmatprep.subr.bf16.mxu1 %v2595_v57  ;;  %v4192_v45 = vmax.f32 %v3604_v39, %v3608_v44 }
 0x5e4   : > { %v3923_v36 = vpop.eup %2857  ;;  %v3928_v49 = vpop.f32.mrb[38].mxu1 }
 0x5e5   : > { %v3926_v30 = vpop.eup %2859  ;;  %2867 = vrcp.f32 %v1699_v29  ;;  %v1762_v37 = vadd.f32 %v3919_v28, %v1761_v2  ;;  %v2609_v20 = vpack.c.bf16 %v3928_v49, %v3909_v33  ;;  %v1233_v53 = vpop.f32.mrb[39].mxu1  ;;  %v4207_v49 = vld [vmem:[#allocation25_spill] sm:$0xff] }
 0x5e6   : > { %v1769_v62 = vadd.f32 %v3926_v30, %v3923_v36  ;;  %v3935_v4 = vpop.eup %2861  ;;  %2634 = vmatpush1.bf16.msra.mxu0 %v2633_v41  ;;  %1285 = vmax.xlane.f32.xlu1 %v1284_v3  ;;  %v2607_v16 = vpack.c.bf16 %v1233_v53, %v3917_v56 }
 0x5e7   : > { %v1763_v32 = vrot.slane %v1762_v37, 4  ;;  %2598 = vmatpush1.bf16.xpose.msra.mxu1 %v2597_v43 }
 0x5e8   : > { %v1770_v40 = vadd.f32 %v3935_v4, %v1769_v62  ;;  %v3939_v55 = vpop.eup %2863  ;;  %2600 = vmatprep.subr.bf16.mxu1 %v2599_v15  ;;  %v3941_v48 = vpop.f32.mrb[40].mxu1 }
 0x5e9   : > { %v1764_v38 = vadd.f32 %v1763_v32, %v1762_v37  ;;  %v1239_v47 = vpop.f32.mrb[41].mxu1  ;;  %v4193_v37 = vmax.f32 %v3610_v46, %v3616_v51 }
 0x5ea   : > { %v1771_v17 = vadd.f32 %v3939_v55, %v1770_v40  ;;  %1288 = vmax.xlane.f32.xlu1 %v4192_v45 }
 0x5eb   : > { %v2866_v41 = vpop.eup %2865  ;;  %v1765_v11 = vrot.slane %v1764_v38, 2 }
 0x5ec   : > { %v1772_v3 = vrot.slane %v1771_v17, 4  ;;  %v1702_v26 = vmul.f32 %v2866_v41, %v3797_v12  ;;  %v1704_v43 = vmul.f32 %v2866_v41, %v3804_v34  ;;  %v1706_v57 = vmul.f32 %v2866_v41, %v3813_v27  ;;  %v1243_v25 = vpop.f32.mrb[42].mxu1 }
 0x5ed   : > { %v1708_v15 = vmul.f32 %v2866_v41, %v3817_v0  ;;  %v1766_v50 = vadd.f32 %v1765_v11, %v1764_v38  ;;  %v2613_v29 = vpack.c.bf16 %v1243_v25, %v3941_v48  ;;  %v1245_v2 = vpop.f32.mrb[43].mxu1  ;;  %v4198_v25 = vld [vmem:[#allocation19_spill] sm:$0xff] }
 0x5ee   : > { %v1773_v56 = vadd.f32 %v1772_v3, %v1771_v17  ;;  %1291 = vmax.xlane.f32.xlu1 %v4193_v37  ;;  %v2637_v62 = vpack.c.bf16 %v1704_v43, %v1702_v26  ;;  %v2611_v32 = vpack.c.bf16 %v1245_v2, %v1239_v47  ;;  %v4194_v47 = vmax.f32 %v3622_v58, %v3626_v61  ;;  %v4200_v2 = vld [vmem:[#allocation20_spill] sm:$0xff]  ;;  %v4201_v37 = vld [vmem:[#allocation21_spill] sm:$0xff] }
 0x5ef   : > { %v2641_v53 = vpack.c.bf16 %v1708_v15, %v1706_v57  ;;  %v2868_v12 = vpop.eup %2867  ;;  %v1767_v40 = vrot.slane %v1766_v50, 1  ;;  %2602 = vmatpush1.bf16.xpose.msra.mxu1 %v2601_v5  ;;  %v4197_v15 = vld [vmem:[#allocation18_spill] sm:$0xff] }
 0x5f0   : > { %v1774_v34 = vrot.slane %v1773_v56, 2  ;;  %v1703_v27 = vmul.f32 %v2868_v12, %v3824_v8  ;;  %v1705_v0 = vmul.f32 %v2868_v12, %v3834_v24  ;;  %v1707_v38 = vmul.f32 %v2868_v12, %v3841_v42  ;;  %2604 = vmatprep.subr.bf16.mxu1 %v2603_v31  ;;  %v1249_v17 = vpop.f32.mrb[44].mxu1 }
 0x5f1   : > { %v1709_v48 = vmul.f32 %v2868_v12, %v3846_v21  ;;  %v1768_v45 = vadd.f32 %v1767_v40, %v1766_v50  ;;  %v1251_v11 = vpop.f32.mrb[45].mxu1  ;;  %v4195_v21 = vld [vmem:[#allocation17_spill] sm:$0xff]  ;;  %v4199_v50 = vmax.f32 %v4197_v15, %v4198_v25 }
 0x5f2   : > { %v1775_v41 = vadd.f32 %v1774_v34, %v1773_v56  ;;  %v2635_v3 = vpack.c.bf16 %v1705_v0, %v1703_v27  ;;  %1294 = vmax.xlane.f32.xlu1 %v4194_v47  ;;  %v4196_v31 = vmax.f32 %v3638_v10, %v4195_v21  ;;  %v4203_v0 = vld [vmem:[#allocation22_spill] sm:$0xff] }
 0x5f3   : > { %v2639_v26 = vpack.c.bf16 %v1709_v48, %v1707_v38  ;;  %2869 = vrcp.f32 %v1768_v45 }
 0x5f4   : > { %v1776_v5 = vrot.slane %v1775_v41, 1  ;;  %2636 = vmatprep.subr.bf16.mxu0 %v2635_v3  ;;  %v1255_v8 = vpop.f32.mrb[46].mxu1 }
 0x5f5   : > { %2638 = vmatpush1.bf16.msra.mxu0 %v2637_v62  ;;  %v2617_v42 = vpack.c.bf16 %v1255_v8, %v1249_v17  ;;  %v1257_v43 = vpop.f32.mrb[47].mxu1  ;;  %v4202_v62 = vmax.f32 %v4200_v2, %v4201_v37  ;;  %v4209_v17 = vld [vmem:[#allocation27_spill] sm:$0xff]  ;;  %v4211_v8 = vld [vmem:[#allocation29_spill] sm:$0xff] }
 0x5f6   : > { %v1777_v24 = vadd.f32 %v1776_v5, %v1775_v41  ;;  %2640 = vmatprep.subr.bf16.mxu0 %v2639_v26  ;;  %1297 = vmax.xlane.f32.xlu1 %v4196_v31  ;;  %v2615_v57 = vpack.c.bf16 %v1257_v43, %v1251_v11 }
 0x5f7   : > { %2606 = vmatpush1.bf16.xpose.msra.mxu1 %v2605_v54 }
 0x5f8   : > { %2871 = vrcp.f32 %v1777_v24  ;;  %2608 = vmatprep.subr.bf16.mxu1 %v2607_v16 }
 0x5f9   : > { %2642 = vmatpush1.bf16.msra.mxu0 %v2641_v53 }
 0x5fa   : > { %1300 = vmax.xlane.f32.xlu1 %v4199_v50 }
 0x5fd   : > { %v2870_v56 = vpop.eup %2869 }
 0x5fe   : > { %1303 = vmax.xlane.f32.xlu1 %v4202_v62  ;;  %v1780_v12 = vmul.f32 %v2870_v56, %v3897_v19  ;;  %v1782_v40 = vmul.f32 %v2870_v56, %v3901_v22  ;;  %v1784_v34 = vmul.f32 %v2870_v56, %v3911_v35  ;;  %v1786_v1 = vmul.f32 %v2870_v56, %v3919_v28  ;;  %v4204_v35 = vld [vmem:[#allocation23_spill] sm:$0xff] }
 0x5ff   : > { %2610 = vmatpush1.bf16.xpose.msra.mxu1 %v2609_v20  ;;  %v4205_v38 = vmax.f32 %v4203_v0, %v4204_v35 }
 0x600   : > { %v2645_v9 = vpack.c.bf16 %v1782_v40, %v1780_v12  ;;  %v2649_v54 = vpack.c.bf16 %v1786_v1, %v1784_v34  ;;  %2612 = vmatprep.subr.bf16.mxu1 %v2611_v32  ;;  %v4212_v34 = vld [vmem:[#allocation30_spill] sm:$0xff] }
 0x602   : > { %v2872_v16 = vpop.eup %2871  ;;  %1306 = vmax.xlane.f32.xlu1 %v4205_v38 }
 0x603   : > { %v1781_v53 = vmul.f32 %v2872_v16, %v3923_v36  ;;  %v1783_v27 = vmul.f32 %v2872_v16, %v3926_v30  ;;  %v1785_v19 = vmul.f32 %v2872_v16, %v3935_v4  ;;  %v1787_v22 = vmul.f32 %v2872_v16, %v3939_v55  ;;  %v4206_v36 = vld [vmem:[#allocation24_spill] sm:$0xff]  ;;  %v4208_v55 = vld [vmem:[#allocation26_spill] sm:$0xff] }
 0x605   : > { %v2643_v28 = vpack.c.bf16 %v1783_v27, %v1781_v53  ;;  %v2647_v48 = vpack.c.bf16 %v1787_v22, %v1785_v19 }
 0x607   : > { %2644 = vmatprep.subr.bf16.mxu0 %v2643_v28  ;;  %2614 = vmatpush1.bf16.xpose.msra.mxu1 %v2613_v29  ;;  %v4210_v29 = vld [vmem:[#allocation28_spill] sm:$0xff] }
 0x608   : > { %2646 = vmatpush1.bf16.msra.mxu0 %v2645_v9  ;;  %2616 = vmatprep.subr.bf16.mxu1 %v2615_v57 }
 0x609   : > { %2648 = vmatprep.subr.bf16.mxu0 %v2647_v48 }
 0x60c   : > { %2650 = vmatpush1.bf16.msra.mxu0 %v2649_v54 }
 0x60f   : > { %2618 = vmatpush1.bf16.xpose.msra.mxu1 %v2617_v42 }
 0x656   : > { %v1262_v33 = vpop.xlane.xlu1 %1261  ;;  %v1265_v4 = vpop.xlane.xlu0 %1264 }
 0x657   : > { %v1308_v30 = vsub.f32 %v4206_v36, %v1262_v33  ;;  %v1309_v20 = vsub.f32 %v4207_v49, %v1262_v33  ;;  %v1310_v32 = vsub.f32 %v4208_v55, %v1265_v4  ;;  %v1311_v45 = vsub.f32 %v4209_v17, %v1265_v4  ;;  %v4213_v55 = vld [vmem:[#allocation31_spill] sm:$0xff] }
 0x659   : > { %v1340_v41 = vmul.f32 1.442695, %v1308_v30  ;;  %v1342_v11 = vmul.f32 1.442695, %v1309_v20  ;;  %v1344_v3 = vmul.f32 1.442695, %v1310_v32 }
 0x65a   : > { %v1346_v26 = vmul.f32 1.442695, %v1311_v45  ;;  %v1268_v47 = vpop.xlane.xlu1 %1267 }
 0x65b   : > { %2873 = vpow2.f32 %v1340_v41  ;;  %v1312_v5 = vsub.f32 %v4210_v29, %v1268_v47  ;;  %v1313_v24 = vsub.f32 %v4211_v8, %v1268_v47 }
 0x65c   : > { %2875 = vpow2.f32 %v1342_v11 }
 0x65d   : > { %2877 = vpow2.f32 %v1344_v3  ;;  %v1348_v42 = vmul.f32 1.442695, %v1312_v5  ;;  %v1350_v43 = vmul.f32 1.442695, %v1313_v24 }
 0x65e   : > { %2879 = vpow2.f32 %v1346_v26  ;;  %v1271_v31 = vpop.xlane.xlu1 %1270 }
 0x65f   : > { %2881 = vpow2.f32 %v1348_v42  ;;  %v1314_v57 = vsub.f32 %v3784_v23, %v1271_v31  ;;  %v1315_v50 = vsub.f32 %v3789_v6, %v1271_v31 }
 0x660   : > { %2883 = vpow2.f32 %v1350_v43 }
 0x661   : > { %v1352_v56 = vmul.f32 1.442695, %v1314_v57  ;;  %v1354_v62 = vmul.f32 1.442695, %v1315_v50 }
 0x662   : > { %v1274_v12 = vpop.xlane.xlu1 %1273 }
 0x663   : > { %2885 = vpow2.f32 %v1352_v56  ;;  %v1316_v40 = vsub.f32 %v3800_v18, %v1274_v12  ;;  %v1317_v1 = vsub.f32 %v4212_v34, %v1274_v12 }
 0x664   : > { %2887 = vpow2.f32 %v1354_v62 }
 0x665   : > { %v2874_v9 = vpop.eup %2873  ;;  %v1356_v54 = vmul.f32 1.442695, %v1316_v40  ;;  %v1358_v16 = vmul.f32 1.442695, %v1317_v1 }
 0x666   : > { %v2876_v53 = vpop.eup %2875 }
 0x667   : > { %v2878_v27 = vpop.eup %2877  ;;  %2889 = vpow2.f32 %v1356_v54  ;;  %1860 = vmatprep.mubr.f32.mxu1 %v2876_v53  ;;  %v1404_v23 = vadd.f32 %v2876_v53, %v2874_v9  ;;  %v1277_v6 = vpop.xlane.xlu1 %1276 }
 0x668   : > { %v2880_v19 = vpop.eup %2879  ;;  %2891 = vpow2.f32 %v1358_v16  ;;  %1861 = vmatmul.mubr.f32.vlgmr.msra.gmra.mrb[48].mxu1 %v2874_v9  ;;  %v1318_v38 = vsub.f32 %v3830_v52, %v1277_v6  ;;  %v1319_v18 = vsub.f32 %v3839_v7, %v1277_v6 }
 0x669   : > { %v2882_v22 = vpop.eup %2881  ;;  %1405 = vadd.xlane.f32.xlu1 %v1404_v23  ;;  %1865 = vmatprep.mubr.f32.mxu1 %v2880_v19  ;;  %v1407_v28 = vadd.f32 %v2880_v19, %v2878_v27 }
 0x66a   : > { %v2884_v48 = vpop.eup %2883  ;;  %v1360_v33 = vmul.f32 1.442695, %v1318_v38  ;;  %v1362_v36 = vmul.f32 1.442695, %v1319_v18 }
 0x66b   : > { %v1410_v30 = vadd.f32 %v2884_v48, %v2882_v22  ;;  %v1280_v49 = vpop.xlane.xlu1 %1279 }
 0x66c   : > { %1866 = vmatmul.mubr.f32.gmra.mrb[50].mxu1 %v2878_v27  ;;  %2893 = vpow2.f32 %v1360_v33  ;;  %v1320_v4 = vsub.f32 %v3853_v63, %v1280_v49  ;;  %v1321_v32 = vsub.f32 %v4213_v55, %v1280_v49 }
 0x66d   : > { %v2886_v20 = vpop.eup %2885  ;;  %1408 = vadd.xlane.f32.xlu1 %v1407_v28  ;;  %1870 = vmatprep.mubr.f32.mxu1 %v2884_v48  ;;  %2895 = vpow2.f32 %v1362_v36 }
 0x66e   : > { %v2888_v17 = vpop.eup %2887  ;;  %1411 = vadd.xlane.f32.xlu0 %v1410_v30  ;;  %v1364_v52 = vmul.f32 1.442695, %v1320_v4  ;;  %v1366_v7 = vmul.f32 1.442695, %v1321_v32 }
 0x66f   : > { %v1413_v45 = vadd.f32 %v2888_v17, %v2886_v20  ;;  %v1283_v41 = vpop.xlane.xlu1 %1282 }
 0x670   : > { %1871 = vmatmul.mubr.f32.gmra.mrb[52].mxu1 %v2882_v22  ;;  %2897 = vpow2.f32 %v1364_v52  ;;  %v1322_v3 = vsub.f32 %v3869_v14, %v1283_v41  ;;  %v1323_v26 = vsub.f32 %v3874_v59, %v1283_v41 }
 0x671   : > { %v2890_v11 = vpop.eup %2889  ;;  %1875 = vmatprep.mubr.f32.mxu1 %v2888_v17  ;;  %1414 = vadd.xlane.f32.xlu1 %v1413_v45  ;;  %2899 = vpow2.f32 %v1366_v7 }
 0x672   : > { %v2892_v63 = vpop.eup %2891  ;;  %v1368_v47 = vmul.f32 1.442695, %v1322_v3  ;;  %v1370_v29 = vmul.f32 1.442695, %v1323_v26 }
 0x673   : > { %v1416_v5 = vadd.f32 %v2892_v63, %v2890_v11  ;;  %v1286_v8 = vpop.xlane.xlu1 %1285 }
 0x674   : > { %1876 = vmatmul.mubr.f32.gmra.mrb[54].mxu1 %v2886_v20  ;;  %2901 = vpow2.f32 %v1368_v47  ;;  %v1324_v24 = vsub.f32 %v3887_v60, %v1286_v8  ;;  %v1325_v42 = vsub.f32 %v3893_v13, %v1286_v8 }
 0x675   : > { %1880 = vmatprep.mubr.f32.mxu1 %v2892_v63  ;;  %1417 = vadd.xlane.f32.xlu0 %v1416_v5  ;;  %2903 = vpow2.f32 %v1370_v29 }
 0x676   : > { %v2894_v14 = vpop.eup %2893  ;;  %v1372_v43 = vmul.f32 1.442695, %v1324_v24  ;;  %v1374_v59 = vmul.f32 1.442695, %v1325_v42 }
 0x677   : > { %v2896_v31 = vpop.eup %2895  ;;  %v1289_v57 = vpop.xlane.xlu1 %1288 }
 0x678   : > { %1881 = vmatmul.mubr.f32.gmra.mrb[56].mxu1 %v2890_v11  ;;  %2905 = vpow2.f32 %v1372_v43  ;;  %v1326_v50 = vsub.f32 %v3604_v39, %v1289_v57  ;;  %v1327_v56 = vsub.f32 %v3608_v44, %v1289_v57  ;;  %v1419_v62 = vadd.f32 %v2896_v31, %v2894_v14 }
 0x679   : > { %1885 = vmatprep.mubr.f32.mxu1 %v2896_v31  ;;  %2907 = vpow2.f32 %v1374_v59 }
 0x67a   : > { %v2898_v60 = vpop.eup %2897  ;;  %v1376_v12 = vmul.f32 1.442695, %v1326_v50  ;;  %v1378_v13 = vmul.f32 1.442695, %v1327_v56  ;;  %1420 = vadd.xlane.f32.xlu1 %v1419_v62  ;;  %v4214_v56 = vmov 0.0  }
 0x67b   : > { %v2900_v40 = vpop.eup %2899  ;;  %v1292_v34 = vpop.xlane.xlu1 %1291 }
 0x67c   : > { %1886 = vmatmul.mubr.f32.gmra.mrb[58].mxu1 %v2894_v14  ;;  %2909 = vpow2.f32 %v1376_v12  ;;  %v1328_v1 = vsub.f32 %v3610_v46, %v1292_v34  ;;  %v1329_v9 = vsub.f32 %v3616_v51, %v1292_v34  ;;  %v1422_v54 = vadd.f32 %v2900_v40, %v2898_v60 }
 0x67d   : > { %1890 = vmatprep.mubr.f32.mxu1 %v2900_v40  ;;  %2911 = vpow2.f32 %v1378_v13  ;;  %v353_v13 = vld [vmem:[#allocation9] sm:$0xff] }
 0x67e   : > { %v2902_v39 = vpop.eup %2901  ;;  %v1380_v44 = vmul.f32 1.442695, %v1328_v1  ;;  %v1382_v16 = vmul.f32 1.442695, %v1329_v9  ;;  %1423 = vadd.xlane.f32.xlu0 %v1422_v54 }
 0x67f   : > { %v2904_v53 = vpop.eup %2903  ;;  %v1295_v27 = vpop.xlane.xlu1 %1294 }
 0x680   : > { %1891 = vmatmul.mubr.f32.gmra.mrb[60].mxu1 %v2898_v60  ;;  %2913 = vpow2.f32 %v1380_v44  ;;  %v1330_v23 = vsub.f32 %v3622_v58, %v1295_v27  ;;  %v1331_v19 = vsub.f32 %v3626_v61, %v1295_v27  ;;  %v1425_v6 = vadd.f32 %v2904_v53, %v2902_v39  ;;  %v354_v44 = vld [vmem:[#allocation9 + $0x8] sm:$0xff] }
 0x681   : > { %1895 = vmatprep.mubr.f32.mxu1 %v2904_v53  ;;  %2915 = vpow2.f32 %v1382_v16 }
 0x682   : > { %v2906_v46 = vpop.eup %2905  ;;  %v1384_v51 = vmul.f32 1.442695, %v1330_v23  ;;  %v1386_v22 = vmul.f32 1.442695, %v1331_v19  ;;  %1426 = vadd.xlane.f32.xlu1 %v1425_v6 }
 0x683   : > { %v2908_v38 = vpop.eup %2907  ;;  %v1298_v18 = vpop.xlane.xlu1 %1297 }
 0x684   : > { %1896 = vmatmul.mubr.f32.gmra.mrb[62].mxu1 %v2902_v39  ;;  %2917 = vpow2.f32 %v1384_v51  ;;  %v1332_v28 = vsub.f32 %v3638_v10, %v1298_v18  ;;  %v1333_v48 = vsub.f32 %v4195_v21, %v1298_v18  ;;  %v4014_v33 = vadd.f32 %v2908_v38, %v2906_v46 }
 0x685   : > { %1900 = vmatprep.mubr.f32.mxu1 %v2908_v38  ;;  %2919 = vpow2.f32 %v1386_v22 }
 0x686   : > { %v2910_v58 = vpop.eup %2909  ;;  %v1388_v61 = vmul.f32 1.442695, %v1332_v28  ;;  %v1390_v36 = vmul.f32 1.442695, %v1333_v48 }
 0x687   : > { %v2912_v30 = vpop.eup %2911  ;;  %v1301_v49 = vpop.xlane.xlu1 %1300 }
 0x688   : > { %1901 = vmatmul.mubr.f32.gmra.mrb[64].mxu1 %v2906_v46  ;;  %2921 = vpow2.f32 %v1388_v61  ;;  %v1334_v20 = vsub.f32 %v4197_v15, %v1301_v49  ;;  %v1335_v4 = vsub.f32 %v4198_v25, %v1301_v49  ;;  %v1431_v55 = vadd.f32 %v2912_v30, %v2910_v58  ;;  %v355_v46 = vld [vmem:[#allocation9 + $0x10] sm:$0xff] }
 0x689   : > { %1905 = vmatprep.mubr.f32.mxu1 %v2912_v30  ;;  %2923 = vpow2.f32 %v1390_v36 }
 0x68a   : > { %v2914_v10 = vpop.eup %2913  ;;  %v1392_v21 = vmul.f32 1.442695, %v1334_v20  ;;  %v1394_v32 = vmul.f32 1.442695, %v1335_v4  ;;  %1432 = vadd.xlane.f32.xlu1 %v1431_v55  ;;  %v357_v55 = vld [vmem:[#allocation9 + $0x20] sm:$0xff] }
 0x68b   : > { %v2916_v17 = vpop.eup %2915  ;;  %v1304_v52 = vpop.xlane.xlu1 %1303 }
 0x68c   : > { %1906 = vmatmul.mubr.f32.gmra.mrb[66].mxu1 %v2910_v58  ;;  %2925 = vpow2.f32 %v1392_v21  ;;  %v1336_v7 = vsub.f32 %v4200_v2, %v1304_v52  ;;  %v1337_v45 = vsub.f32 %v4201_v37, %v1304_v52  ;;  %v1434_v41 = vadd.f32 %v2916_v17, %v2914_v10  ;;  %v356_v58 = vld [vmem:[#allocation9 + $0x18] sm:$0xff] }
 0x68d   : > { %1910 = vmatprep.mubr.f32.mxu1 %v2916_v17  ;;  %2927 = vpow2.f32 %v1394_v32 }
 0x68e   : > { %v2918_v15 = vpop.eup %2917  ;;  %v1396_v25 = vmul.f32 1.442695, %v1336_v7  ;;  %v1398_v11 = vmul.f32 1.442695, %v1337_v45  ;;  %1435 = vadd.xlane.f32.xlu0 %v1434_v41  ;;  %v358_v41 = vld [vmem:[#allocation9 + $0x28] sm:$0xff] }
 0x68f   : > { %v2920_v3 = vpop.eup %2919  ;;  %v1307_v26 = vpop.xlane.xlu1 %1306 }
 0x690   : > { %1911 = vmatmul.mubr.f32.gmra.mrb[68].mxu1 %v2914_v10  ;;  %2929 = vpow2.f32 %v1396_v25  ;;  %v1338_v63 = vsub.f32 %v4203_v0, %v1307_v26  ;;  %v1339_v47 = vsub.f32 %v4204_v35, %v1307_v26  ;;  %v1437_v29 = vadd.f32 %v2920_v3, %v2918_v15 }
 0x691   : > { %1915 = vmatprep.mubr.f32.mxu1 %v2920_v3  ;;  %2931 = vpow2.f32 %v1398_v11 }
 0x692   : > { %v2922_v2 = vpop.eup %2921  ;;  %v1400_v37 = vmul.f32 1.442695, %v1338_v63  ;;  %v1402_v5 = vmul.f32 1.442695, %v1339_v47  ;;  %1438 = vadd.xlane.f32.xlu1 %v1437_v29  ;;  %v359_v47 = vld [vmem:[#allocation9 + $0x30] sm:$0xff] }
 0x693   : > { %v2924_v8 = vpop.eup %2923 }
 0x694   : > { %1916 = vmatmul.mubr.f32.gmra.mrb[70].mxu1 %v2918_v15  ;;  %2933 = vpow2.f32 %v1400_v37  ;;  %v1440_v24 = vadd.f32 %v2924_v8, %v2922_v2 }
 0x695   : > { %1920 = vmatprep.mubr.f32.mxu1 %v2924_v8  ;;  %2935 = vpow2.f32 %v1402_v5 }
 0x696   : > { %v2926_v42 = vpop.eup %2925  ;;  %1441 = vadd.xlane.f32.xlu0 %v1440_v24 }
 0x697   : > { %v2928_v14 = vpop.eup %2927 }
 0x698   : > { %1921 = vmatmul.mubr.f32.gmra.mrb[72].mxu1 %v2922_v2  ;;  %v1443_v0 = vadd.f32 %v2928_v14, %v2926_v42 }
 0x699   : > { %1925 = vmatprep.mubr.f32.mxu1 %v2928_v14 }
 0x69a   : > { %v2930_v35 = vpop.eup %2929  ;;  %1444 = vadd.xlane.f32.xlu1 %v1443_v0 }
 0x69b   : > { %v2932_v43 = vpop.eup %2931 }
 0x69c   : > { %1926 = vmatmul.mubr.f32.gmra.mrb[74].mxu1 %v2926_v42  ;;  %v1446_v59 = vadd.f32 %v2932_v43, %v2930_v35  ;;  %v360_v42 = vld [vmem:[#allocation9 + $0x38] sm:$0xff] }
 0x69d   : > { %1930 = vmatprep.mubr.f32.mxu1 %v2932_v43 }
 0x69e   : > { %v2934_v31 = vpop.eup %2933  ;;  %1447 = vadd.xlane.f32.xlu0 %v1446_v59 }
 0x69f   : > { %v2936_v57 = vpop.eup %2935 }
 0x6a0   : > { %1931 = vmatmul.mubr.f32.gmra.mrb[76].mxu1 %v2930_v35  ;;  %v1449_v50 = vadd.f32 %v2936_v57, %v2934_v31 }
 0x6a1   : > { %1935 = vmatprep.mubr.f32.mxu1 %v2936_v57 }
 0x6a2   : > { %1429 = vadd.xlane.f32.xlu0 %v4014_v33  ;;  %1450 = vadd.xlane.f32.xlu1 %v1449_v50 }
 0x6a4   : > { %1936 = vmatmul.mubr.f32.gmra.mrb[78].mxu1 %v2934_v31  ;;  %v361_v31 = vld [vmem:[#allocation9 + $0x40] sm:$0xff] }
 0x6a5   : > { %2270 = vmatprep.mubr.f32.mxu1 %v4214_v56 }
 0x6f6   : > { %v1406_v62 = vpop.xlane.xlu1 %1405 }
 0x6f7   : > { %2937 = vrcp.f32 %v1406_v62 }
 0x6fa   : > { %v1409_v60 = vpop.xlane.xlu1 %1408 }
 0x6fb   : > { %v1412_v12 = vpop.xlane.xlu0 %1411  ;;  %2939 = vrcp.f32 %v1409_v60 }
 0x6fc   : > { %2941 = vrcp.f32 %v1412_v12 }
 0x6fe   : > { %v1415_v1 = vpop.xlane.xlu1 %1414 }
 0x6ff   : > { %2943 = vrcp.f32 %v1415_v1 }
 0x701   : > { %v2938_v39 = vpop.eup %2937 }
 0x702   : > { %v1418_v40 = vpop.xlane.xlu0 %1417 }
 0x703   : > { %2945 = vrcp.f32 %v1418_v40  ;;  %v362_v40 = vld [vmem:[#allocation9 + $0x48] sm:$0xff] }
 0x705   : > { %v2940_v6 = vpop.eup %2939 }
 0x706   : > { %v2942_v33 = vpop.eup %2941 }
 0x707   : > { %v1421_v18 = vpop.xlane.xlu1 %1420 }
 0x708   : > { %2947 = vrcp.f32 %v1421_v18 }
 0x709   : > { %v2944_v4 = vpop.eup %2943 }
 0x70b   : > { %v1424_v16 = vpop.xlane.xlu0 %1423 }
 0x70c   : > { %2949 = vrcp.f32 %v1424_v16 }
 0x70d   : > { %v2946_v45 = vpop.eup %2945 }
 0x70f   : > { %v1427_v17 = vpop.xlane.xlu1 %1426 }
 0x710   : > { %2951 = vrcp.f32 %v1427_v17 }
 0x712   : > { %v2948_v63 = vpop.eup %2947 }
 0x716   : > { %v2950_v24 = vpop.eup %2949 }
 0x717   : > { %v1433_v37 = vpop.xlane.xlu1 %1432 }
 0x71a   : > { %v2952_v59 = vpop.eup %2951 }
 0x71b   : > { %v1436_v51 = vpop.xlane.xlu0 %1435 }
 0x71f   : > { %v1439_v62 = vpop.xlane.xlu1 %1438 }
 0x723   : > { %v4024_v61 = vpop.xlane.xlu0 %1441 }
 0x72b   : > { %v4026_v10 = vpop.xlane.xlu0 %1447 }
 0x72f   : > { %v1430_v11 = vpop.xlane.xlu0 %1429 }
 0x730   : > { %2953 = vrcp.f32 %v1430_v11 }
 0x731   : > { %2955 = vrcp.f32 %v1433_v37 }
 0x732   : > { %2957 = vrcp.f32 %v1436_v51 }
 0x733   : > { %2959 = vrcp.f32 %v1439_v62 }
 0x734   : > { %2961 = vrcp.f32 %v4024_v61 }
 0x73b   : > { %v1862_v34 = vpop.f32.mrb[48].mxu1 }
 0x73c   : > { %v1941_v9 = vmul.f32 %v1862_v34, %v353_v13  ;;  %v1864_v54 = vpop.f32.mrb[49].mxu1  ;;  %v2954_v13 = vpop.eup %2953 }
 0x73e   : > { %v1957_v53 = vmul.f32 %v2938_v39, %v1941_v9  ;;  %v2956_v39 = vpop.eup %2955 }
 0x73f   : > { %v1867_v27 = vpop.f32.mrb[50].mxu1 }
 0x740   : > { %v1942_v23 = vmul.f32 %v1867_v27, %v354_v44  ;;  %2005 = vxpose.xlu0.b32.start [1/16] %v1957_v53, 128  ;;  %v1869_v19 = vpop.f32.mrb[51].mxu1  ;;  %v363_v44 = vld [vmem:[#allocation9 + $0x50] sm:$0xff]  ;;  %v1445_v27 = vpop.xlane.xlu1 %1444 }
 0x741   : > { %2963 = vrcp.f32 %v1445_v27 }
 0x742   : > { %v1958_v22 = vmul.f32 %v2940_v6, %v1942_v23  ;;  %v2958_v6 = vpop.eup %2957  ;;  %2965 = vrcp.f32 %v4026_v10 }
 0x743   : > { %v1872_v38 = vpop.f32.mrb[52].mxu1 }
 0x744   : > { %v1943_v28 = vmul.f32 %v1872_v38, %v355_v46  ;;  %v1874_v48 = vpop.f32.mrb[53].mxu1  ;;  %2006 = vxpose.xlu0.b32.cont [2/16] %v1958_v22, 128  ;;  %v364_v46 = vld [vmem:[#allocation9 + $0x58] sm:$0xff]  ;;  %v1451_v61 = vpop.xlane.xlu1 %1450 }
 0x745   : > { %v365_v48 = vld [vmem:[#allocation9 + $0x60] sm:$0xff]  ;;  %2967 = vrcp.f32 %v1451_v61 }
 0x746   : > { %v1959_v36 = vmul.f32 %v2942_v33, %v1943_v28  ;;  %v2960_v28 = vpop.eup %2959 }
 0x747   : > { %v1877_v30 = vpop.f32.mrb[54].mxu1 }
 0x748   : > { %v1944_v49 = vmul.f32 %v1877_v30, %v356_v58  ;;  %v1879_v20 = vpop.f32.mrb[55].mxu1  ;;  %2007 = vxpose.xlu0.b32.cont [3/16] %v1959_v36, 128 }
 0x749   : > { %v366_v20 = vld [vmem:[#allocation9 + $0x68] sm:$0xff] }
 0x74a   : > { %v1960_v21 = vmul.f32 %v2944_v4, %v1944_v49  ;;  %v2962_v49 = vpop.eup %2961 }
 0x74b   : > { %v1882_v32 = vpop.f32.mrb[56].mxu1  ;;  %v2964_v17 = vpop.eup %2963 }
 0x74c   : > { %v1945_v52 = vmul.f32 %v1882_v32, %v357_v55  ;;  %v1884_v7 = vpop.f32.mrb[57].mxu1  ;;  %2008 = vxpose.xlu0.b32.cont [4/16] %v1960_v21, 128  ;;  %v2966_v10 = vpop.eup %2965 }
 0x74e   : > { %v1961_v15 = vmul.f32 %v2946_v45, %v1945_v52  ;;  %v367_v52 = vld [vmem:[#allocation9 + $0x70] sm:$0xff] }
 0x74f   : > { %v1887_v25 = vpop.f32.mrb[58].mxu1 }
 0x750   : > { %v1946_v3 = vmul.f32 %v1887_v25, %v358_v41  ;;  %v1889_v26 = vpop.f32.mrb[59].mxu1  ;;  %2009 = vxpose.xlu0.b32.cont [5/16] %v1961_v15, 128  ;;  %v368_v25 = vld [vmem:[#allocation9 + $0x78] sm:$0xff] }
 0x752   : > { %v1962_v29 = vmul.f32 %v2948_v63, %v1946_v3 }
 0x753   : > { %v1892_v2 = vpop.f32.mrb[60].mxu1 }
 0x754   : > { %v1947_v5 = vmul.f32 %v1892_v2, %v359_v47  ;;  %v1894_v8 = vpop.f32.mrb[61].mxu1  ;;  %2010 = vxpose.xlu0.b32.cont [6/16] %v1962_v29, 128  ;;  %v2968_v47 = vpop.eup %2967 }
 0x756   : > { %v1963_v14 = vmul.f32 %v2950_v24, %v1947_v5 }
 0x757   : > { %v1897_v0 = vpop.f32.mrb[62].mxu1 }
 0x758   : > { %v1948_v35 = vmul.f32 %v1897_v0, %v360_v42  ;;  %v1899_v43 = vpop.f32.mrb[63].mxu1  ;;  %2011 = vxpose.xlu0.b32.cont [7/16] %v1963_v14, 128 }
 0x75a   : > { %v1964_v57 = vmul.f32 %v2952_v59, %v1948_v35 }
 0x75b   : > { %v1902_v50 = vpop.f32.mrb[64].mxu1 }
 0x75c   : > { %v1949_v60 = vmul.f32 %v1902_v50, %v361_v31  ;;  %v1904_v12 = vpop.f32.mrb[65].mxu1  ;;  %2012 = vxpose.xlu0.b32.cont [8/16] %v1964_v57, 128 }
 0x75d   : > { %v3174_v12 = vmov 2  }
 0x75e   : > { %v1965_v34 = vmul.f32 %v2954_v13, %v1949_v60  ;;  %2785 = vset.pattern.permute.xlu1 %v3174_v12  ;;  %v4048_v13 = vld [vmem:[%s4121_s1] sm:$0xff] }
 0x75f   : > { %v1907_v1 = vpop.f32.mrb[66].mxu1  ;;  %2199 = vperm.xlu1 %2785, %v4048_v13  }
 0x760   : > { %v1950_v9 = vmul.f32 %v1907_v1, %v362_v40  ;;  %v1909_v54 = vpop.f32.mrb[67].mxu1  ;;  %2013 = vxpose.xlu0.b32.cont [9/16] %v1965_v34, 128  ;;  %v4054_v40 = vld [vmem:[%s4121_s1 + $0x8] sm:$0xff] }
 0x762   : > { %v1966_v16 = vmul.f32 %v2956_v39, %v1950_v9 }
 0x763   : > { %v1912_v53 = vpop.f32.mrb[68].mxu1  ;;  %2203 = vperm.xlu1 %2785, %v4054_v40  }
 0x764   : > { %v1951_v23 = vmul.f32 %v1912_v53, %v363_v44  ;;  %v1914_v19 = vpop.f32.mrb[69].mxu1  ;;  %2014 = vxpose.xlu0.b32.cont [10/16] %v1966_v16, 128 }
 0x766   : > { %v1967_v51 = vmul.f32 %v2958_v6, %v1951_v23 }
 0x767   : > { %v1917_v22 = vpop.f32.mrb[70].mxu1 }
 0x768   : > { %v1952_v38 = vmul.f32 %v1917_v22, %v364_v46  ;;  %v1919_v18 = vpop.f32.mrb[71].mxu1  ;;  %2015 = vxpose.xlu0.b32.cont [11/16] %v1967_v51, 128 }
 0x76a   : > { %v1968_v33 = vmul.f32 %v2960_v28, %v1952_v38 }
 0x76b   : > { %v1922_v58 = vpop.f32.mrb[72].mxu1 }
 0x76c   : > { %v1953_v36 = vmul.f32 %v1922_v58, %v365_v48  ;;  %v1924_v30 = vpop.f32.mrb[73].mxu1  ;;  %2016 = vxpose.xlu0.b32.cont [12/16] %v1968_v33, 128 }
 0x76e   : > { %v1969_v4 = vmul.f32 %v2962_v49, %v1953_v36 }
 0x76f   : > { %v1927_v55 = vpop.f32.mrb[74].mxu1 }
 0x770   : > { %v1954_v21 = vmul.f32 %v1927_v55, %v366_v20  ;;  %v1929_v32 = vpop.f32.mrb[75].mxu1  ;;  %2017 = vxpose.xlu0.b32.cont [13/16] %v1969_v4, 128 }
 0x772   : > { %v1970_v7 = vmul.f32 %v2964_v17, %v1954_v21 }
 0x773   : > { %v1932_v45 = vpop.f32.mrb[76].mxu1 }
 0x774   : > { %v1955_v41 = vmul.f32 %v1932_v45, %v367_v52  ;;  %v1934_v15 = vpop.f32.mrb[77].mxu1  ;;  %2018 = vxpose.xlu0.b32.cont [14/16] %v1970_v7, 128 }
 0x776   : > { %v1971_v11 = vmul.f32 %v2966_v10, %v1955_v41 }
 0x777   : > { %v1937_v3 = vpop.f32.mrb[78].mxu1 }
 0x778   : > { %v1956_v26 = vmul.f32 %v1937_v3, %v368_v25  ;;  %v1939_v63 = vpop.f32.mrb[79].mxu1  ;;  %2019 = vxpose.xlu0.b32.cont [15/16] %v1971_v11, 128 }
 0x77a   : > { %v1972_v29 = vmul.f32 %v2968_v47, %v1956_v26 }
 0x77c   : > { %2020 = vxpose.xlu0.b32.end [16/16] %v1972_v29, 128 }
 0x7c0   : > { %v2021_v2 = vpop.trf.xlu0 }
 0x7c1   : > { %2102 = vmatmul.mubr.f32.vlgmr.msra.gmra.mrb[52].mxu0 %v2021_v2 }
 0x7c2   : > { %2107 = vmatprep.mubr.f32.mxu0 %v4214_v56 }
 0x7c4   : > { %v2022_v37 = vpop.trf.xlu0 }
 0x7c5   : > { %2108 = vmatmul.mubr.f32.gmra.mrb[54].mxu0 %v2022_v37 }
 0x7c6   : > { %2113 = vmatprep.mubr.f32.mxu0 %v4214_v56 }
 0x7c8   : > { %v2023_v5 = vpop.trf.xlu0 }
 0x7c9   : > { %2114 = vmatmul.mubr.f32.gmra.mrb[56].mxu0 %v2023_v5 }
 0x7ca   : > { %2119 = vmatprep.mubr.f32.mxu0 %v4214_v56 }
 0x7cc   : > { %v2024_v8 = vpop.trf.xlu0 }
 0x7cd   : > { %2120 = vmatmul.mubr.f32.gmra.mrb[58].mxu0 %v2024_v8 }
 0x7ce   : > { %2125 = vmatprep.mubr.f32.mxu0 %v4214_v56 }
 0x7d0   : > { %v2025_v24 = vpop.trf.xlu0 }
 0x7d1   : > { %2126 = vmatmul.mubr.f32.gmra.mrb[60].mxu0 %v2025_v24  ;;  %v349_v24 = vld [vmem:[%s4124_s4] sm:$0xff] }
 0x7d2   : > { %2131 = vmatprep.mubr.f32.mxu0 %v4214_v56 }
 0x7d4   : > { %v2026_v42 = vpop.trf.xlu0 }
 0x7d5   : > { %2132 = vmatmul.mubr.f32.gmra.mrb[62].mxu0 %v2026_v42  ;;  %v350_v42 = vld [vmem:[%s4124_s4 + $0x8] sm:$0xff] }
 0x7d6   : > { %2137 = vmatprep.mubr.f32.mxu0 %v4214_v56 }
 0x7d8   : > { %v2027_v14 = vpop.trf.xlu0 }
 0x7d9   : > { %2138 = vmatmul.mubr.f32.gmra.mrb[64].mxu0 %v2027_v14 }
 0x7da   : > { %2143 = vmatprep.mubr.f32.mxu0 %v4214_v56 }
 0x7dc   : > { %v2028_v0 = vpop.trf.xlu0 }
 0x7dd   : > { %2144 = vmatmul.mubr.f32.gmra.mrb[66].mxu0 %v2028_v0 }
 0x7de   : > { %2149 = vmatprep.mubr.f32.mxu0 %v4214_v56  ;;  %v2200_v14 = vpop.permute.xlu1 %2199 }
 0x7e0   : > { %v2029_v35 = vpop.trf.xlu0 }
 0x7e1   : > { %2150 = vmatmul.mubr.f32.gmra.mrb[68].mxu0 %v2029_v35 }
 0x7e2   : > { %2155 = vmatprep.mubr.f32.mxu0 %v4214_v56 }
 0x7e4   : > { %v2030_v43 = vpop.trf.xlu0 }
 0x7e5   : > { %2156 = vmatmul.mubr.f32.gmra.mrb[70].mxu0 %v2030_v43 }
 0x7e6   : > { %2161 = vmatprep.mubr.f32.mxu0 %v4214_v56 }
 0x7e8   : > { %v2031_v59 = vpop.trf.xlu0 }
 0x7e9   : > { %2162 = vmatmul.mubr.f32.gmra.mrb[72].mxu0 %v2031_v59 }
 0x7ea   : > { %2167 = vmatprep.mubr.f32.mxu0 %v4214_v56 }
 0x7ec   : > { %v2032_v31 = vpop.trf.xlu0 }
 0x7ed   : > { %2168 = vmatmul.mubr.f32.gmra.mrb[74].mxu0 %v2032_v31 }
 0x7ee   : > { %2173 = vmatprep.mubr.f32.mxu0 %v4214_v56 }
 0x7f0   : > { %v2033_v57 = vpop.trf.xlu0 }
 0x7f1   : > { %2174 = vmatmul.mubr.f32.gmra.mrb[76].mxu0 %v2033_v57  ;;  %v2204_v57 = vpop.permute.xlu1 %2203 }
 0x7f2   : > { %2179 = vmatprep.mubr.f32.mxu0 %v4214_v56 }
 0x7f4   : > { %v2034_v50 = vpop.trf.xlu0 }
 0x7f5   : > { %2180 = vmatmul.mubr.f32.gmra.mrb[78].mxu0 %v2034_v50 }
 0x7f6   : > { %2185 = vmatprep.mubr.f32.mxu0 %v4214_v56 }
 0x7f8   : > { %v2035_v62 = vpop.trf.xlu0 }
 0x7f9   : > { %2186 = vmatmul.mubr.f32.gmra.mrb[80].mxu0 %v2035_v62 }
 0x7fa   : > { %2191 = vmatprep.mubr.f32.mxu0 %v4214_v56 }
 0x7fc   : > { %v2036_v60 = vpop.trf.xlu0 }
 0x7fd   : > { %2192 = vmatmul.mubr.f32.gmra.mrb[82].mxu0 %v2036_v60 }
 0x894   : > { %v2103_v34 = vpop.f32.mrb[52].mxu0 }
 0x895   : > { %v2105_v1 = vpop.f32.mrb[53].mxu0 }
 0x898   : > { %v2109_v9 = vpop.f32.mrb[54].mxu0 }
 0x899   : > { %v2653_v54 = vpack.c.bf16 %v2109_v9, %v2103_v34  ;;  %v2111_v39 = vpop.f32.mrb[55].mxu0 }
 0x89a   : > { %v2651_v44 = vpack.c.bf16 %v2111_v39, %v2105_v1 }
 0x89c   : > { %v2115_v16 = vpop.f32.mrb[56].mxu0  ;;  %2652 = vmatprep.subr.bf16.mxu1 %v2651_v44 }
 0x89d   : > { %v2117_v53 = vpop.f32.mrb[57].mxu0  ;;  %2654 = vmatpush1.bf16.msra.mxu1 %v2653_v54 }
 0x8a0   : > { %v2121_v27 = vpop.f32.mrb[58].mxu0 }
 0x8a1   : > { %v2657_v23 = vpack.c.bf16 %v2121_v27, %v2115_v16  ;;  %v2123_v19 = vpop.f32.mrb[59].mxu0 }
 0x8a2   : > { %v2655_v6 = vpack.c.bf16 %v2123_v19, %v2117_v53 }
 0x8a4   : > { %v2127_v46 = vpop.f32.mrb[60].mxu0  ;;  %2656 = vmatprep.subr.bf16.mxu1 %v2655_v6 }
 0x8a5   : > { %v2129_v51 = vpop.f32.mrb[61].mxu0  ;;  %2658 = vmatpush1.bf16.msra.mxu1 %v2657_v23 }
 0x8a8   : > { %v2133_v22 = vpop.f32.mrb[62].mxu0 }
 0x8a9   : > { %v2661_v38 = vpack.c.bf16 %v2133_v22, %v2127_v46  ;;  %v2135_v18 = vpop.f32.mrb[63].mxu0 }
 0x8aa   : > { %v2659_v28 = vpack.c.bf16 %v2135_v18, %v2129_v51 }
 0x8ac   : > { %v2139_v48 = vpop.f32.mrb[64].mxu0  ;;  %2660 = vmatprep.subr.bf16.mxu1 %v2659_v28 }
 0x8ad   : > { %v2141_v33 = vpop.f32.mrb[65].mxu0  ;;  %2662 = vmatpush1.bf16.msra.mxu1 %v2661_v38 }
 0x8b0   : > { %v2145_v58 = vpop.f32.mrb[66].mxu0 }
 0x8b1   : > { %v2665_v61 = vpack.c.bf16 %v2145_v58, %v2139_v48  ;;  %v2147_v36 = vpop.f32.mrb[67].mxu0 }
 0x8b2   : > { %v2663_v30 = vpack.c.bf16 %v2147_v36, %v2141_v33 }
 0x8b4   : > { %v2151_v49 = vpop.f32.mrb[68].mxu0  ;;  %2664 = vmatprep.subr.bf16.mxu1 %v2663_v30 }
 0x8b5   : > { %v2153_v20 = vpop.f32.mrb[69].mxu0  ;;  %2666 = vmatpush1.bf16.msra.mxu1 %v2665_v61  ;;  %v3176_v61 = vmov 4  }
 0x8b6   : > { %2788 = vset.pattern.permute.xlu0 %v3176_v61 }
 0x8b8   : > { %v2157_v4 = vpop.f32.mrb[70].mxu0 }
 0x8b9   : > { %v2669_v55 = vpack.c.bf16 %v2157_v4, %v2151_v49  ;;  %v2159_v21 = vpop.f32.mrb[71].mxu0 }
 0x8ba   : > { %v2667_v32 = vpack.c.bf16 %v2159_v21, %v2153_v20 }
 0x8bc   : > { %v2163_v17 = vpop.f32.mrb[72].mxu0  ;;  %2668 = vmatprep.subr.bf16.mxu1 %v2667_v32 }
 0x8bd   : > { %v2165_v52 = vpop.f32.mrb[73].mxu0  ;;  %2670 = vmatpush1.bf16.msra.mxu1 %v2669_v55 }
 0x8c0   : > { %v2169_v7 = vpop.f32.mrb[74].mxu0 }
 0x8c1   : > { %v2673_v45 = vpack.c.bf16 %v2169_v7, %v2163_v17  ;;  %v2171_v41 = vpop.f32.mrb[75].mxu0 }
 0x8c2   : > { %v2671_v15 = vpack.c.bf16 %v2171_v41, %v2165_v52 }
 0x8c4   : > { %v2175_v10 = vpop.f32.mrb[76].mxu0  ;;  %2672 = vmatprep.subr.bf16.mxu1 %v2671_v15 }
 0x8c5   : > { %v2177_v25 = vpop.f32.mrb[77].mxu0  ;;  %2674 = vmatpush1.bf16.msra.mxu1 %v2673_v45 }
 0x8c8   : > { %v2181_v11 = vpop.f32.mrb[78].mxu0 }
 0x8c9   : > { %v2677_v3 = vpack.c.bf16 %v2181_v11, %v2175_v10  ;;  %v2183_v26 = vpop.f32.mrb[79].mxu0 }
 0x8ca   : > { %v2675_v63 = vpack.c.bf16 %v2183_v26, %v2177_v25 }
 0x8cc   : > { %v2187_v47 = vpop.f32.mrb[80].mxu0  ;;  %2676 = vmatprep.subr.bf16.mxu1 %v2675_v63 }
 0x8cd   : > { %v2189_v29 = vpop.f32.mrb[81].mxu0  ;;  %2678 = vmatpush1.bf16.msra.mxu1 %v2677_v3 }
 0x8d0   : > { %v2193_v2 = vpop.f32.mrb[82].mxu0 }
 0x8d1   : > { %v2681_v37 = vpack.c.bf16 %v2193_v2, %v2187_v47  ;;  %v2195_v5 = vpop.f32.mrb[83].mxu0 }
 0x8d2   : > { %v2679_v8 = vpack.c.bf16 %v2195_v5, %v2189_v29 }
 0x8d4   : > { %2680 = vmatprep.subr.bf16.mxu1 %v2679_v8 }
 0x8d5   : > { %2682 = vmatpush1.bf16.msra.mxu1 %v2681_v37 }
 0x8d8   : > { %2271 = vmatmul.mubr.f32.vlgmr.msra.gmra.mrb[80].mxu1 %v349_v24 }
 0x8d9   : > { %2276 = vmatprep.mubr.f32.mxu1 %v4214_v56  ;;  %v3175_v56 = vmov 3  }
 0x8da   : > { %2786 = vset.pattern.permute.xlu1 %v3175_v56 }
 0x8dc   : > { %2277 = vmatmul.mubr.f32.gmra.mrb[82].mxu1 %v350_v42 }
 0x9ab   : > { %v2272_v0 = vpop.f32.mrb[80].mxu1 }
 0x9ac   : > { %v2273_v35 = vadd.f32 %v2272_v0, %v2200_v14  ;;  %v2274_v43 = vpop.f32.mrb[81].mxu1 }
 0x9ad   : > { %v2275_v59 = vadd.f32 %v2274_v43, %v2200_v14 }
 0x9af   : > { %v2283_v31 = vadd.f32 %v2275_v59, %v2273_v35  ;;  %v2278_v50 = vpop.f32.mrb[82].mxu1 }
 0x9b0   : > { %v2279_v62 = vadd.f32 %v2278_v50, %v2204_v57  ;;  %v2280_v60 = vpop.f32.mrb[83].mxu1 }
 0x9b1   : > { %v2281_v12 = vadd.f32 %v2280_v60, %v2204_v57 }
 0x9b2   : > { %v2284_v34 = vadd.f32 %v2283_v31, %v2279_v62 }
 0x9b4   : > { %v2285_v1 = vadd.f32 %v2284_v34, %v2281_v12 }
 0x9b6   : > { %2286 = vadd.xlane.f32.xlu1 %v2285_v1 }
 0xa43   : > { %v2287_v9 = vpop.xlane.xlu1 %2286 }
 0xa44   : > { %v2288_v54 = vrot.slane %v2287_v9, 4 }
 0xa46   : > { %v2289_v39 = vadd.f32 %v2288_v54, %v2287_v9 }
 0xa48   : > { %v2290_v44 = vrot.slane %v2289_v39, 2 }
 0xa4a   : > { %v2291_v16 = vadd.f32 %v2290_v44, %v2289_v39 }
 0xa4c   : > { %v2292_v53 = vrot.slane %v2291_v16, 1 }
 0xa4e   : > { %v2293_v27 = vadd.f32 %v2292_v53, %v2291_v16 }
 0xa50   : > { %2685 = vpush %v2293_v27 }
 0xa81   : > { %s2686_s13 = spop %2685 }
 0xa82   : > { %s2297_s19 = smul.f32 0.00024414063, %s2686_s13  ;;  %s3093_s13 = scalar_lea.vmem %s3092_s9, 1024 }
 0xa83   : > { %p3095_p1 = scmp.lt.s32.totalorder %s3093_s13, %s3087_s11 }
 0xa84   : > { %v2298_v23 = vstv %s2297_s19 }
 0xa85   : > { %v2299_v19 = vsub.f32 %v2273_v35, %v2298_v23  ;;  %v2300_v6 = vsub.f32 %v2275_v59, %v2298_v23  ;;  %v2301_v46 = vsub.f32 %v2279_v62, %v2298_v23  ;;  %v2302_v51 = vsub.f32 %v2281_v12, %v2298_v23  ;;  %p3096_p2 = por %p3095_p1, %p3094_p12 }
 0xa87   : > { %v2303_v22 = vmul.f32 %v2299_v19, %v2299_v19  ;;  %v2304_v38 = vmul.f32 %v2300_v6, %v2300_v6  ;;  %v2305_v18 = vmul.f32 %v2301_v46, %v2301_v46  ;;  %v2306_v48 = vmul.f32 %v2302_v51, %v2302_v51  ;;  %p3097_p4 = pnand %p3096_p2, %p3090_p7 }
 0xa89   : > { %v2307_v28 = vadd.f32 %v2304_v38, %v2303_v22 }
 0xa8b   : > { %v2308_v33 = vadd.f32 %v2307_v28, %v2305_v18 }
 0xa8d   : > { %v2309_v58 = vadd.f32 %v2308_v33, %v2306_v48 }
 0xa8f   : > { %2310 = vadd.xlane.f32.xlu1 %v2309_v58 }
 0xaa0   : > { %2332 = vperm.xlu1 %2786, %v4048_v13  }
 0xaa4   : > { %2336 = vperm.xlu1 %2786, %v4054_v40  }
 0xaa8   : > { %2787 = vset.pattern.permute.xlu1 %v3176_v61 }
 0xaa9   : > { %2344 = vperm.xlu1 %2787, %v4048_v13  }
 0xaad   : > { %2348 = vperm.xlu1 %2787, %v4054_v40  }
 0xb1c   : > { %v2311_v36 = vpop.xlane.xlu1 %2310 }
 0xb1d   : > { %v2312_v30 = vrot.slane %v2311_v36, 4 }
 0xb1f   : > { %v2313_v49 = vadd.f32 %v2312_v30, %v2311_v36 }
 0xb20   : > { %v2333_v13 = vpop.permute.xlu1 %2332 }
 0xb21   : > { %v2314_v20 = vrot.slane %v2313_v49, 2 }
 0xb23   : > { %v2315_v4 = vadd.f32 %v2314_v20, %v2313_v49 }
 0xb24   : > { %v2337_v52 = vpop.permute.xlu1 %2336 }
 0xb25   : > { %v2316_v55 = vrot.slane %v2315_v4, 1 }
 0xb27   : > { %v2317_v21 = vadd.f32 %v2316_v55, %v2315_v4 }
 0xb28   : > { %v2345_v40 = vpop.permute.xlu1 %2344 }
 0xb29   : > { %2687 = vpush %v2317_v21 }
 0xb2c   : > { %v2349_v63 = vpop.permute.xlu1 %2348 }
 0xb5a   : > { %s2688_s14 = spop %2687 }
 0xb5b   : > { %s2321_s18 = smul.f32 0.00024414063, %s2688_s14 }
 0xb5d   : > { %s2322_s16 = sadd.f32 1e-05, %s2321_s18 }
 0xb5f   : > { %v2323_v32 = vstv %s2322_s16 }
 0xb60   : > { %2969 = vrsqrt.f32 %v2323_v32 }
 0xb6a   : > { %v2970_v17 = vpop.eup %2969 }
 0xb6b   : > { %2689 = vpush %v2970_v17 }
 0xb9c   : > { %s2690_s22 = spop %2689 }
 0xb9d   : > { %v2326_v7 = vstv %s2690_s22 }
 0xb9e   : > { %v2327_v45 = vmul.f32 %v2326_v7, %v2299_v19  ;;  %v2328_v41 = vmul.f32 %v2326_v7, %v2300_v6  ;;  %v2329_v15 = vmul.f32 %v2326_v7, %v2301_v46  ;;  %v2330_v10 = vmul.f32 %v2326_v7, %v2302_v51 }
 0xba0   : > { %v2339_v25 = vmul.f32 %v2333_v13, %v2327_v45  ;;  %v2340_v11 = vmul.f32 %v2333_v13, %v2328_v41  ;;  %v2341_v3 = vmul.f32 %v2337_v52, %v2329_v15  ;;  %v2342_v26 = vmul.f32 %v2337_v52, %v2330_v10 }
 0xba2   : > { %v2351_v47 = vadd.f32 %v2345_v40, %v2339_v25  ;;  %v2352_v29 = vadd.f32 %v2345_v40, %v2340_v11  ;;  %v2353_v2 = vadd.f32 %v2349_v63, %v2341_v3  ;;  %v2354_v37 = vadd.f32 %v2349_v63, %v2342_v26 }
 0xba4   : > { %2355 = vst [vmem:[%s340_s23] sm:$0xff] %v2351_v47  ;;  %2356 = vst [vmem:[%s340_s23 + $0x8] sm:$0xff] %v2352_v29 }
 0xba5   : > { %2357 = vst [vmem:[%s340_s23 + $0x10] sm:$0xff] %v2353_v2  ;;  %2358 = vst [vmem:[%s340_s23 + $0x18] sm:$0xff] %v2354_v37 }
 0xba6   : > { %3100 = shalt.err (!%p3097_p4)
}
 0xba7   : > { %s3101_s19 = scalar_lea.hbm %s4076_s8, 512  ;;  %s3105_s16 = scalar_lea.hbm %s4127_s7, 1024 }
 0xba8   : > { %p3102_p9 = scmp.ne.s32.totalorder %s4076_s8, %s3101_s19  ;;  %p3106_p8 = scmp.lt.u32.totalorder %s4076_s8, %s4127_s7 }
 0xba9   : > { %p3107_p13 = scmp.lt.u32.totalorder %s3105_s16, %s3101_s19  ;;  %p3109_p10 = scmp.lt.u32.totalorder %s3101_s19, %s4076_s8 }
 0xbaa   : > { %p3103_p0 = pnand %p3102_p9, %p3365_p5 }
 0xbab   : > { %p3108_p6 = por %p3107_p13, %p3106_p8 }
 0xbac   : > { %p3104_p11 = pneg %p3103_p0 }
 0xbad   : > { %p3110_p3 = por %p3109_p10, %p3108_p6 }
 0xbaf   : > { %p3111_p7 = pnand %p3110_p3, %p3104_p11 }
 0xbb1   : > { %3114 = shalt.err (!%p3111_p7)
}
 0xbb2   : > { %s3178_s29 = smov 256   ;;  %s3179_s10 = smov 16  }
 0xbb3   : > { %2705 = dma.vmem_to_hbm [thread:$0]  (%p3365_p5), %s4071_s15, 512, %s4076_s8, %s2360_s28, %s3178_s29, %s3178_s29, %s3179_s10  }
 0xbb4 PF: > { %s4215_s17 = sld [smem:[#allocation16_spill]]  ;;  %s2388_s11 = sand.u32 1, %s3149_s24  }
 0xbb5   : > { %p4217_p1 = scmp.ge.s32.totalorder %s3161_s27, 2  ;;  %s2389_s30 = scalar_lea.sflag [#allocation5], %s2388_s11 }
 0xbba   : > { %p4216_p12 = scmp.ne.s32.totalorder %s4215_s17, 0 }
 0xbbc   : > { %p2722_p2 = pnand %p4217_p1, %p4216_p12 }
 0xbbe   : > { %3144 = dma.done.wait (!%p2722_p2), %s2389_s30, 512  }
 0xbbf   : > { %3146 = vsyncadd (!%p2722_p2), %s2389_s30, 4294966784  ;;  %p22_p4 = scmp.ge.s32.totalorder %s3333_s21, 4   ;;  %s4218_s24 = smov %s3153_s25 }
 0xbc0   : > { %s4219_s25 = smov %s3157_s26  ;;  %s4220_s26 = smov %s3361_s12 }
 0xbc1   : > { %s4221_s27 = smov %s3333_s21  ;;  %24 = sbr.rel (!%p22_p4) target bundleno = 9 (0x9), region = 105 }
 0xbc8   :  { %2394 = vsyncpa [#allocation4], 1 }
 0xbc9   :  { %2396 = vsyncpa [#allocation4 + $0x1], 1 }
 0xbca   :  { %2397 = vsyncpa [#allocation7], 1 }
 0xbcb   :  { %2398 = vsyncpa [#allocation10], 1 }
 0xbcc   :  { %2399 = vsyncpa [#allocation5], 1 }
 0xbcd   :  { %2401 = vsyncpa [#allocation5 + $0x1], 1 }

</bundles_post_ra>
